<compile_context>
chip_gen: v7x
topology: tpu7x:2x2x1
jax: 0.10.0
libtpu: 0.0.40
codegen_flags: <defaults>
</compile_context>

<pallas_src>
import functools
import math

import jax
import jax.numpy as jnp
from jax.experimental import pallas as pl
from jax.experimental.pallas import tpu as pltpu


# ----------------------------------------------------------------------------
# Tiling / compiler-param helpers
# ----------------------------------------------------------------------------
def _row_plan(m, cap=256):
    """Return (row_tile, padded_rows): pad rows to 8 (small) or to cap (large)."""
    if m <= cap:
        tm = max(8, ((m + 7) // 8) * 8)
        return tm, tm
    mp = ((m + cap - 1) // cap) * cap
    return cap, mp


def _lane_tile(n, cap=512):
    """Tile the lane dim only when large and a multiple of 128 (else full n)."""
    if n <= cap:
        return n
    for t in range(cap - (cap % 128), 0, -128):
        if n % t == 0:
            return t
    return n


def _blk_bytes(shape, dtype):
    """Bytes for one VMEM block, padded to the hardware tile."""
    itemsize = jnp.dtype(dtype).itemsize
    s = list(shape)
    if s:
        s[-1] = -(-s[-1] // 128) * 128
    if len(s) >= 2:
        sub = 8 if itemsize >= 4 else 8 * (4 // itemsize)
        s[-2] = -(-s[-2] // sub) * sub
    n = 1
    for d in s:
        n *= d
    return n * itemsize


def _cparams(dims, blocks):
    """CompilerParams with an explicit scoped-VMEM limit from block footprint."""
    need = sum(_blk_bytes(s, d) for s, d in blocks)
    limit = int(min(max(2 * need + (4 << 20), 32 << 20), 96 << 20))
    return pltpu.CompilerParams(dimension_semantics=dims, vmem_limit_bytes=limit)


def _pad_rows(x, mp):
    m = x.shape[0]
    return x if m == mp else jnp.pad(x, ((0, mp - m), (0, 0)))


# ----------------------------------------------------------------------------
# Linear (used for QKV / Q / KV projections and the generator)
# ----------------------------------------------------------------------------
def _linear_kernel(x_ref, w_ref, b_ref, o_ref, *, activation):
    acc = jnp.dot(x_ref[...].astype(jnp.bfloat16), w_ref[...],
                  preferred_element_type=jnp.float32) + b_ref[...]
    if activation == "relu":
        acc = jnp.maximum(acc, 0.0)
    o_ref[...] = acc.astype(o_ref.dtype)


def pallas_linear(x, w_t, b, activation=None, out_dtype=jnp.float32,
                  row_cap=256, lane_cap=512):
    """x: (M, K) f32, w_t: pre-transposed (K, N) bf16, b: (1, N) f32."""
    M, K = x.shape
    N = w_t.shape[1]
    tm, Mp = _row_plan(M, row_cap)
    tn = _lane_tile(N, lane_cap)
    gm, gn = Mp // tm, N // tn
    xp = _pad_rows(x, Mp)

    x_bytes = Mp * K * x.dtype.itemsize
    w_bytes = K * N * w_t.dtype.itemsize
    # Grid order that minimizes HBM traffic: the operand whose block index is
    # constant along the fast axis stays VMEM-resident (no re-DMA).
    if x_bytes + gm * w_bytes <= w_bytes + gn * x_bytes:
        grid = (gm, gn)                      # x-row block resident across j
        x_map, w_map = (lambda i, j: (i, 0)), (lambda i, j: (0, j))
        b_map, o_map = (lambda i, j: (0, j)), (lambda i, j: (i, j))
    else:
        grid = (gn, gm)                      # weight slice resident across i
        x_map, w_map = (lambda j, i: (i, 0)), (lambda j, i: (0, j))
        b_map, o_map = (lambda j, i: (0, j)), (lambda j, i: (i, j))

    out = pl.pallas_call(
        functools.partial(_linear_kernel, activation=activation),
        out_shape=jax.ShapeDtypeStruct((Mp, N), out_dtype),
        grid=grid,
        in_specs=[pl.BlockSpec((tm, K), x_map),
                  pl.BlockSpec((K, tn), w_map),
                  pl.BlockSpec((1, tn), b_map)],
        out_specs=pl.BlockSpec((tm, tn), o_map),
        compiler_params=_cparams(
            ("parallel", "parallel"),
            [((tm, K), x.dtype), ((K, tn), w_t.dtype),
             ((1, tn), b.dtype), ((tm, tn), out_dtype)]),
    )(xp, w_t, b)
    return out if Mp == M else out[:M]


# ----------------------------------------------------------------------------
# LayerNorm helpers and fused residual blocks
# ----------------------------------------------------------------------------
def _layernorm(z, g, b, eps):
    mu = jnp.mean(z, axis=-1, keepdims=True)
    zc = z - mu
    var = jnp.mean(zc * zc, axis=-1, keepdims=True)
    return zc * jax.lax.rsqrt(var + eps) * g + b


def _proj_add_ln_kernel(a_ref, w_ref, b_ref, res_ref, g_ref, be_ref, o_ref, *, eps):
    proj = jnp.dot(a_ref[...].astype(jnp.bfloat16), w_ref[...],
                   preferred_element_type=jnp.float32) + b_ref[...]
    z = proj + res_ref[...]
    o_ref[...] = _layernorm(z, g_ref[...], be_ref[...], eps).astype(o_ref.dtype)


def pallas_proj_add_ln(a, w_t, b, res, gamma, beta, eps=1e-5):
    """LayerNorm(res + a @ w_t + b); a: (M, K) bf16/f32, res: (M, E) f32."""
    M, K = a.shape
    E = w_t.shape[1]
    tm, Mp = _row_plan(M)
    ap = _pad_rows(a, Mp)
    rp = _pad_rows(res, Mp)
    out = pl.pallas_call(
        functools.partial(_proj_add_ln_kernel, eps=eps),
        out_shape=jax.ShapeDtypeStruct((Mp, E), jnp.float32),
        grid=(Mp // tm,),
        in_specs=[pl.BlockSpec((tm, K), lambda i: (i, 0)),
                  pl.BlockSpec((K, E), lambda i: (0, 0)),
                  pl.BlockSpec((1, E), lambda i: (0, 0)),
                  pl.BlockSpec((tm, E), lambda i: (i, 0)),
                  pl.BlockSpec((1, E), lambda i: (0, 0)),
                  pl.BlockSpec((1, E), lambda i: (0, 0))],
        out_specs=pl.BlockSpec((tm, E), lambda i: (i, 0)),
        compiler_params=_cparams(
            ("parallel",),
            [((tm, K), a.dtype), ((K, E), w_t.dtype),
             ((tm, E), jnp.float32), ((tm, E), jnp.float32)]),
    )(ap, w_t, b, rp, gamma, beta)
    return out if Mp == M else out[:M]


def _ffn_add_ln_kernel(x_ref, w1_ref, b1_ref, w2_ref, b2_ref, g_ref, be_ref,
                       o_ref, *, eps, f_chunk):
    x = x_ref[...]                                   # (tm, E) f32
    xb = x.astype(jnp.bfloat16)
    F = w1_ref.shape[1]
    acc = jnp.zeros((x.shape[0], w2_ref.shape[1]), jnp.float32)
    # Chunk the hidden F dimension: keeps the live intermediate (tm, f_chunk)
    # instead of (tm, F), bounding register/VMEM pressure.
    for c in range(F // f_chunk):
        off = c * f_chunk
        h = jnp.dot(xb, w1_ref[:, pl.ds(off, f_chunk)],
                    preferred_element_type=jnp.float32)
        h = jnp.maximum(h + b1_ref[:, pl.ds(off, f_chunk)], 0.0)
        acc = acc + jnp.dot(h.astype(jnp.bfloat16), w2_ref[pl.ds(off, f_chunk), :],
                            preferred_element_type=jnp.float32)
    z = x + acc + b2_ref[...]
    o_ref[...] = _layernorm(z, g_ref[...], be_ref[...], eps).astype(o_ref.dtype)


def pallas_ffn_add_ln(x, w1_t, b1, w2_t, b2, gamma, beta, eps=1e-5):
    """LayerNorm(x + relu(x @ w1_t + b1) @ w2_t + b2); x: (M, E) f32."""
    M, E = x.shape
    F = w1_t.shape[1]
    tm, Mp = _row_plan(M)
    fc = _lane_tile(F, 512)
    xp = _pad_rows(x, Mp)
    out = pl.pallas_call(
        functools.partial(_ffn_add_ln_kernel, eps=eps, f_chunk=fc),
        out_shape=jax.ShapeDtypeStruct((Mp, E), jnp.float32),
        grid=(Mp // tm,),
        in_specs=[pl.BlockSpec((tm, E), lambda i: (i, 0)),
                  pl.BlockSpec((E, F), lambda i: (0, 0)),
                  pl.BlockSpec((1, F), lambda i: (0, 0)),
                  pl.BlockSpec((F, E), lambda i: (0, 0)),
                  pl.BlockSpec((1, E), lambda i: (0, 0)),
                  pl.BlockSpec((1, E), lambda i: (0, 0)),
                  pl.BlockSpec((1, E), lambda i: (0, 0))],
        out_specs=pl.BlockSpec((tm, E), lambda i: (i, 0)),
        compiler_params=_cparams(
            ("parallel",),
            [((tm, E), jnp.float32), ((E, F), w1_t.dtype), ((1, F), jnp.float32),
             ((F, E), w2_t.dtype), ((1, E), jnp.float32),
             ((tm, fc), jnp.float32), ((tm, E), jnp.float32)]),
    )(xp, w1_t, b1, w2_t, b2, gamma, beta)
    return out if Mp == M else out[:M]


def _ln_kernel(x_ref, g_ref, b_ref, o_ref, *, eps):
    o_ref[...] = _layernorm(x_ref[...], g_ref[...], b_ref[...], eps).astype(o_ref.dtype)


def pallas_layernorm(x, gamma, beta, eps=1e-5):
    M, E = x.shape
    tm, Mp = _row_plan(M)
    xp = _pad_rows(x, Mp)
    out = pl.pallas_call(
        functools.partial(_ln_kernel, eps=eps),
        out_shape=jax.ShapeDtypeStruct((Mp, E), jnp.float32),
        grid=(Mp // tm,),
        in_specs=[pl.BlockSpec((tm, E), lambda i: (i, 0)),
                  pl.BlockSpec((1, E), lambda i: (0, 0)),
                  pl.BlockSpec((1, E), lambda i: (0, 0))],
        out_specs=pl.BlockSpec((tm, E), lambda i: (i, 0)),
        compiler_params=_cparams(("parallel",),
                                 [((tm, E), jnp.float32), ((tm, E), jnp.float32)]),
    )(xp, gamma, beta)
    return out if Mp == M else out[:M]


# ----------------------------------------------------------------------------
# Multi-head attention kernels (heads sliced from the packed lane axis)
# ----------------------------------------------------------------------------
def _mha_heads(load_q, load_k, load_v, bias, nhead, scale):
    outs = []
    for h in range(nhead):
        q = load_q(h)                                      # (Lq, dh) bf16
        k = load_k(h)                                      # (Lk, dh) bf16
        v = load_v(h)                                      # (Lk, dh) bf16
        s = jax.lax.dot_general(q, k, (((1,), (1,)), ((), ())),
                                preferred_element_type=jnp.float32)
        s = s * scale + bias                               # (Lq, Lk) f32
        s = s - jnp.max(s, axis=-1, keepdims=True)
        p = jnp.exp(s)
        p = p * pl.reciprocal(jnp.sum(p, axis=-1, keepdims=True), approx=True)
        outs.append(jax.lax.dot_general(p.astype(jnp.bfloat16), v,
                                        (((1,), (0,)), ((), ())),
                                        preferred_element_type=jnp.float32))
    return jnp.concatenate(outs, axis=-1)                  # (Lq, H*dh) lane-dense


def _self_attn_kernel(qkv_ref, am_ref, kpm_ref, o_ref, *, nhead, dh, scale):
    E = nhead * dh
    bias = am_ref[...] + kpm_ref[0]                        # (L, L) f32
    o = _mha_heads(lambda h: qkv_ref[0, :, pl.ds(h * dh, dh)],
                   lambda h: qkv_ref[0, :, pl.ds(E + h * dh, dh)],
                   lambda h: qkv_ref[0, :, pl.ds(2 * E + h * dh, dh)],
                   bias, nhead, scale)
    o_ref[0] = o.astype(o_ref.dtype)


def _cross_attn_kernel(q_ref, kv_ref, am_ref, kpm_ref, o_ref, *, nhead, dh, scale):
    E = nhead * dh
    bias = am_ref[...] + kpm_ref[0]                        # (T, S) f32
    o = _mha_heads(lambda h: q_ref[0, :, pl.ds(h * dh, dh)],
                   lambda h: kv_ref[0, :, pl.ds(h * dh, dh)],
                   lambda h: kv_ref[0, :, pl.ds(E + h * dh, dh)],
                   bias, nhead, scale)
    o_ref[0] = o.astype(o_ref.dtype)


def pallas_self_attention(qkv, attn_mask, kpm_bias, nhead, scale):
    """qkv: (B, L, 3E) bf16; attn_mask: (L, L) f32; kpm_bias: (B, 1, L) f32."""
    B, L, E3 = qkv.shape
    E = E3 // 3
    dh = E // nhead
    return pl.pallas_call(
        functools.partial(_self_attn_kernel, nhead=nhead, dh=dh, scale=scale),
        out_shape=jax.ShapeDtypeStruct((B, L, E), jnp.bfloat16),
        grid=(B,),
        in_specs=[pl.BlockSpec((1, L, E3), lambda b: (b, 0, 0)),
                  pl.BlockSpec((L, L), lambda b: (0, 0)),
                  pl.BlockSpec((1, 1, L), lambda b: (b, 0, 0))],
        out_specs=pl.BlockSpec((1, L, E), lambda b: (b, 0, 0)),
        compiler_params=_cparams(
            ("parallel",),
            [((1, L, E3), qkv.dtype), ((L, L), jnp.float32),
             ((1, 1, L), jnp.float32), ((1, L, E), jnp.bfloat16)]),
    )(qkv, attn_mask, kpm_bias)


def pallas_cross_attention(q, kv, attn_mask, kpm_bias, nhead, scale):
    """q: (B, T, E) bf16; kv: (B, S, 2E) bf16; attn_mask: (T, S) f32."""
    B, T, E = q.shape
    S = kv.shape[1]
    dh = E // nhead
    return pl.pallas_call(
        functools.partial(_cross_attn_kernel, nhead=nhead, dh=dh, scale=scale),
        out_shape=jax.ShapeDtypeStruct((B, T, E), jnp.bfloat16),
        grid=(B,),
        in_specs=[pl.BlockSpec((1, T, E), lambda b: (b, 0, 0)),
                  pl.BlockSpec((1, S, 2 * E), lambda b: (b, 0, 0)),
                  pl.BlockSpec((T, S), lambda b: (0, 0)),
                  pl.BlockSpec((1, 1, S), lambda b: (b, 0, 0))],
        out_specs=pl.BlockSpec((1, T, E), lambda b: (b, 0, 0)),
        compiler_params=_cparams(
            ("parallel",),
            [((1, T, E), q.dtype), ((1, S, 2 * E), kv.dtype),
             ((T, S), jnp.float32), ((1, 1, S), jnp.float32),
             ((1, T, E), jnp.bfloat16)]),
    )(q, kv, attn_mask, kpm_bias)


# ----------------------------------------------------------------------------
# Model glue (batch-major activations, only free reshapes between kernels)
# ----------------------------------------------------------------------------
def self_attn_block(x, p, nhead, attn_mask, kpm_bias, ln_g, ln_b):
    """Post-norm self-attention: LayerNorm(x + MHA(x, x)); x: (B, L, E) f32."""
    B, L, E = x.shape
    dh = E // nhead
    x_flat = x.reshape(B * L, E)
    qkv = pallas_linear(x_flat, p["in_proj_w_t"], p["in_proj_b"],
                        out_dtype=jnp.bfloat16)                     # (B*L, 3E)
    o = pallas_self_attention(qkv.reshape(B, L, 3 * E), attn_mask, kpm_bias,
                              nhead, 1.0 / math.sqrt(dh))           # (B, L, E)
    y = pallas_proj_add_ln(o.reshape(B * L, E), p["out_proj_w_t"],
                           p["out_proj_b"], x_flat, ln_g, ln_b)
    return y.reshape(B, L, E)


def cross_attn_block(y, memory, p, nhead, attn_mask, kpm_bias, ln_g, ln_b):
    """Post-norm cross-attention: LayerNorm(y + MHA(y, memory))."""
    B, T, E = y.shape
    S = memory.shape[1]
    dh = E // nhead
    y_flat = y.reshape(B * T, E)
    q = pallas_linear(y_flat, p["q_w_t"], p["q_b"], out_dtype=jnp.bfloat16)
    kv = pallas_linear(memory.reshape(B * S, E), p["kv_w_t"], p["kv_b"],
                       out_dtype=jnp.bfloat16)
    o = pallas_cross_attention(q.reshape(B, T, E), kv.reshape(B, S, 2 * E),
                               attn_mask, kpm_bias, nhead, 1.0 / math.sqrt(dh))
    out = pallas_proj_add_ln(o.reshape(B * T, E), p["out_proj_w_t"],
                             p["out_proj_b"], y_flat, ln_g, ln_b)
    return out.reshape(B, T, E)


def encoder_layer(x, p, nhead, src_am, src_kpm):
    B, S, E = x.shape
    x = self_attn_block(x, p["self_attn"], nhead, src_am, src_kpm,
                        p["ln1_g"], p["ln1_b"])
    x = pallas_ffn_add_ln(x.reshape(B * S, E),
                          p["linear1_w_t"], p["linear1_b"],
                          p["linear2_w_t"], p["linear2_b"],
                          p["ln2_g"], p["ln2_b"]).reshape(B, S, E)
    return x


def decoder_layer(y, memory, p, nhead, tgt_am, tgt_kpm, mem_am, mem_kpm):
    B, T, E = y.shape
    y = self_attn_block(y, p["self_attn"], nhead, tgt_am, tgt_kpm,
                        p["ln1_g"], p["ln1_b"])
    y = cross_attn_block(y, memory, p["cross_attn"], nhead, mem_am, mem_kpm,
                         p["ln2_g"], p["ln2_b"])
    y = pallas_ffn_add_ln(y.reshape(B * T, E),
                          p["linear1_w_t"], p["linear1_b"],
                          p["linear2_w_t"], p["linear2_b"],
                          p["ln3_g"], p["ln3_b"]).reshape(B, T, E)
    return y


def make_pos_embedding(emb_size, maxlen=5000):
    den = jnp.exp(-jnp.arange(0, emb_size, 2, dtype=jnp.float32)
                  * (math.log(10000.0) / emb_size))
    pos = jnp.arange(0, maxlen, dtype=jnp.float32).reshape(maxlen, 1)
    pe = jnp.zeros((maxlen, emb_size), jnp.float32)
    pe = pe.at[:, 0::2].set(jnp.sin(pos * den))
    pe = pe.at[:, 1::2].set(jnp.cos(pos * den))
    return pe                                             # (maxlen, E)


def seq2seq_transformer_forward(params, src, trg, src_mask, tgt_mask,
                                src_padding_mask, tgt_padding_mask,
                                memory_key_padding_mask, cfg):
    E, H = cfg["emb_size"], cfg["nhead"]
    S, B = src.shape
    T = trg.shape[0]
    pe = params["pos_embedding"]

    # Batch-major internal layout (B, L, E).  Token embeddings are gathered
    # with transposed indices, so no activation transpose is materialized.
    src_emb = params["src_tok_emb"][src.T] * math.sqrt(E) + pe[None, :S, :]
    tgt_emb = params["tgt_tok_emb"][trg.T] * math.sqrt(E) + pe[None, :T, :]

    def kpm_bias(mask, L):
        if mask is None:
            return jnp.zeros((B, 1, L), jnp.float32)
        return jnp.where(mask, jnp.float32(-1e9),
                         jnp.float32(0.0)).reshape(B, 1, L)

    src_kpm = kpm_bias(src_padding_mask, S)
    tgt_kpm = kpm_bias(tgt_padding_mask, T)
    mem_kpm = kpm_bias(memory_key_padding_mask, S)
    src_am = (src_mask if src_mask is not None
              else jnp.zeros((S, S), jnp.float32)).astype(jnp.float32)
    tgt_am = (tgt_mask if tgt_mask is not None
              else jnp.zeros((T, T), jnp.float32)).astype(jnp.float32)
    mem_am = jnp.zeros((T, S), jnp.float32)

    x = src_emb
    for p in params["encoder_layers"]:
        x = encoder_layer(x, p, H, src_am, src_kpm)
    memory = pallas_layernorm(x.reshape(B * S, E),
                              params["enc_norm_g"],
                              params["enc_norm_b"]).reshape(B, S, E)

    y = tgt_emb
    for p in params["decoder_layers"]:
        y = decoder_layer(y, memory, p, H, tgt_am, tgt_kpm, mem_am, mem_kpm)
    y = pallas_layernorm(y.reshape(B * T, E),
                         params["dec_norm_g"], params["dec_norm_b"])

    # Back to PyTorch's (seq, batch) layout once, on the narrow E-wide tensor,
    # so the wide generator output needs no relayout.
    y = y.reshape(B, T, E).transpose(1, 0, 2).reshape(T * B, E)
    logits = pallas_linear(y, params["generator_w_t"], params["generator_b"],
                           lane_cap=1024)
    return logits.reshape(T, B, cfg["tgt_vocab_size"])


# ----------------------------------------------------------------------------
# Deterministic parameter init (synthetic weights; shapes follow the module).
# Matmul weights are stored PRE-TRANSPOSED (K, N) and in bf16; biases and
# LayerNorm params stay f32.  bf16 weights => looser tolerance vs f32 PyTorch.
# ----------------------------------------------------------------------------
def init_params(key, cfg):
    E, F = cfg["emb_size"], cfg["dim_feedforward"]
    keys = iter(jax.random.split(key, 256))

    def nrm(shape, scale=0.02, dtype=jnp.bfloat16):
        return (scale * jax.random.normal(next(keys), shape,
                                          jnp.float32)).astype(dtype)

    def self_attn_params():
        return dict(
            in_proj_w_t=nrm((E, 3 * E)),                  # == in_proj_weight.T
            in_proj_b=jnp.zeros((1, 3 * E), jnp.float32),
            out_proj_w_t=nrm((E, E)),                     # == out_proj.weight.T
            out_proj_b=jnp.zeros((1, E), jnp.float32),
        )

    def cross_attn_params():
        return dict(
            q_w_t=nrm((E, E)), q_b=jnp.zeros((1, E), jnp.float32),
            kv_w_t=nrm((E, 2 * E)), kv_b=jnp.zeros((1, 2 * E), jnp.float32),
            out_proj_w_t=nrm((E, E)),
            out_proj_b=jnp.zeros((1, E), jnp.float32),
        )

    def enc_layer():
        return dict(
            self_attn=self_attn_params(),
            linear1_w_t=nrm((E, F)), linear1_b=jnp.zeros((1, F), jnp.float32),
            linear2_w_t=nrm((F, E)), linear2_b=jnp.zeros((1, E), jnp.float32),
            ln1_g=jnp.ones((1, E), jnp.float32), ln1_b=jnp.zeros((1, E), jnp.float32),
            ln2_g=jnp.ones((1, E), jnp.float32), ln2_b=jnp.zeros((1, E), jnp.float32),
        )

    def dec_layer():
        d = enc_layer()
        d["cross_attn"] = cross_attn_params()
        d["ln3_g"] = jnp.ones((1, E), jnp.float32)
        d["ln3_b"] = jnp.zeros((1, E), jnp.float32)
        return d

    return dict(
        src_tok_emb=nrm((cfg["src_vocab_size"], E), 1.0, jnp.float32),
        tgt_tok_emb=nrm((cfg["tgt_vocab_size"], E), 1.0, jnp.float32),
        pos_embedding=make_pos_embedding(E, cfg.get("maxlen", 5000)),
        encoder_layers=[enc_layer() for _ in range(cfg["num_encoder_layers"])],
        decoder_layers=[dec_layer() for _ in range(cfg["num_decoder_layers"])],
        enc_norm_g=jnp.ones((1, E), jnp.float32),
        enc_norm_b=jnp.zeros((1, E), jnp.float32),
        dec_norm_g=jnp.ones((1, E), jnp.float32),
        dec_norm_b=jnp.zeros((1, E), jnp.float32),
        generator_w_t=nrm((E, cfg["tgt_vocab_size"])),    # == generator.weight.T
        generator_b=jnp.zeros((1, cfg["tgt_vocab_size"]), jnp.float32),
    )


# ----------------------------------------------------------------------------
if __name__ == "__main__":
    cfg = dict(num_encoder_layers=2, num_decoder_layers=2, emb_size=32, nhead=4,
               src_vocab_size=50, tgt_vocab_size=48, dim_feedforward=64,
               dropout=0.1, maxlen=512)
    S, T, B = 8, 8, 2

    root = jax.random.PRNGKey(0)
    params = init_params(root, cfg)

    k_src, k_trg = jax.random.split(jax.random.fold_in(root, 1))
    src = jax.random.randint(k_src, (S, B), 0, cfg["src_vocab_size"], jnp.int32)
    trg = jax.random.randint(k_trg, (T, B), 0, cfg["tgt_vocab_size"], jnp.int32)

    src_mask = jnp.zeros((S, S), jnp.float32)
    tgt_mask = jnp.where(jnp.triu(jnp.ones((T, T), bool), k=1),
                         jnp.float32(-jnp.inf), jnp.float32(0.0))
    src_padding_mask = jnp.zeros((B, S), bool).at[:, S - 1].set(True)
    tgt_padding_mask = jnp.zeros((B, T), bool).at[:, T - 1].set(True)
    memory_key_padding_mask = src_padding_mask

    fwd = jax.jit(functools.partial(seq2seq_transformer_forward, cfg=cfg))
    out = fwd(params, src, trg, src_mask, tgt_mask,
              src_padding_mask, tgt_padding_mask, memory_key_padding_mask)
    jax.block_until_ready(out)
    assert out.shape == (T, B, cfg["tgt_vocab_size"])
    assert bool(jnp.all(jnp.isfinite(out)))
    print("KERNEL_OK")
</pallas_src>

<mosaic_0001>
module attributes {stable_mosaic.version = 11 : i64} {
  func.func @_linear_kernel(%arg0: i32, %arg1: i32, %arg2: memref<16x32xf32, #tpu.memory_space<vmem>>, %arg3: memref<32x96xbf16, #tpu.memory_space<vmem>>, %arg4: memref<1x96xf32, #tpu.memory_space<vmem>>, %arg5: memref<16x96xbf16, #tpu.memory_space<vmem>>) attributes {dimension_semantics = [#tpu.dimension_semantics<parallel>, #tpu.dimension_semantics<parallel>], iteration_bounds = array<i64: 1, 1>, scalar_prefetch = 0 : i64, scratch_operands = 0 : i64, tpu.core_type = #tpu.core_type<tc>, window_params = [{transform_indices = @transform_0, window_bounds = array<i64: 16, 32>}, {transform_indices = @transform_1, window_bounds = array<i64: 32, 96>}, {transform_indices = @transform_2, window_bounds = array<i64: 1, 96>}, {transform_indices = @transform_3, window_bounds = array<i64: 16, 96>}]} {
    %c0 = arith.constant 0 : index
    %c0_0 = arith.constant 0 : index
    %0 = vector.load %arg2[%c0, %c0_0] : memref<16x32xf32, #tpu.memory_space<vmem>>, vector<16x32xf32>
    %1 = arith.truncf %0 : vector<16x32xf32> to vector<16x32xbf16>
    %c0_1 = arith.constant 0 : index
    %c0_2 = arith.constant 0 : index
    %2 = vector.load %arg3[%c0_1, %c0_2] : memref<32x96xbf16, #tpu.memory_space<vmem>>, vector<32x96xbf16>
    %cst = arith.constant dense<0.000000e+00> : vector<16x96xf32>
    %3 = tpu.matmul %1, %2, %cst {dimension_numbers = #tpu.dot_dimension_numbers<[1], [0], [0], [1], [0, 0, 1, 1], [], []>} : vector<16x32xbf16>, vector<32x96xbf16>, vector<16x96xf32> -> vector<16x96xf32>
    %c0_3 = arith.constant 0 : index
    %c0_4 = arith.constant 0 : index
    %4 = vector.load %arg4[%c0_3, %c0_4] : memref<1x96xf32, #tpu.memory_space<vmem>>, vector<1x96xf32>
    %5 = vector.broadcast %4 : vector<1x96xf32> to vector<16x96xf32>
    %6 = arith.addf %3, %5 : vector<16x96xf32>
    %7 = arith.truncf %6 : vector<16x96xf32> to vector<16x96xbf16>
    %c0_5 = arith.constant 0 : index
    %c0_6 = arith.constant 0 : index
    %8 = vector.load %arg5[%c0_5, %c0_6] : memref<16x96xbf16, #tpu.memory_space<vmem>>, vector<16x96xbf16>
    tpu.vector_store %arg5[%c0_5, %c0_6], %7 {strides = array<i32>} : memref<16x96xbf16, #tpu.memory_space<vmem>>, vector<16x96xbf16>,
    return
  }
  func.func @transform_0(%arg0: i32, %arg1: i32) -> (i32, i32) {
    %c0_i32 = arith.constant 0 : i32
    %c0_i32_0 = arith.constant 0 : i32
    return %arg0, %c0_i32 : i32, i32
  }
  func.func @transform_1(%arg0: i32, %arg1: i32) -> (i32, i32) {
    %c0_i32 = arith.constant 0 : i32
    %c0_i32_0 = arith.constant 0 : i32
    return %c0_i32, %arg1 : i32, i32
  }
  func.func @transform_2(%arg0: i32, %arg1: i32) -> (i32, i32) {
    %c0_i32 = arith.constant 0 : i32
    %c0_i32_0 = arith.constant 0 : i32
    return %c0_i32, %arg1 : i32, i32
  }
  func.func @transform_3(%arg0: i32, %arg1: i32) -> (i32, i32) {
    %c0_i32 = arith.constant 0 : i32
    return %arg0, %arg1 : i32, i32
  }
}

module attributes {stable_mosaic.version = 11 : i64} {
  func.func @_self_attn_kernel(%arg0: i32, %arg1: memref<1x8x96xbf16, #tpu.memory_space<vmem>>, %arg2: memref<8x8xf32, #tpu.memory_space<vmem>>, %arg3: memref<1x1x8xf32, #tpu.memory_space<vmem>>, %arg4: memref<1x8x32xbf16, #tpu.memory_space<vmem>>) attributes {dimension_semantics = [#tpu.dimension_semantics<parallel>], iteration_bounds = array<i64: 2>, scalar_prefetch = 0 : i64, scratch_operands = 0 : i64, tpu.core_type = #tpu.core_type<tc>, window_params = [{transform_indices = @transform_0, window_bounds = array<i64: 1, 8, 96>}, {pipeline_mode = #tpu.pipeline_mode<synchronous>, transform_indices = @transform_1, window_bounds = array<i64: 8, 8>}, {transform_indices = @transform_2, window_bounds = array<i64: 1, 1, 8>}, {transform_indices = @transform_3, window_bounds = array<i64: 1, 8, 32>}]} {
    %c0 = arith.constant 0 : index
    %c0_0 = arith.constant 0 : index
    %0 = vector.load %arg2[%c0, %c0_0] : memref<8x8xf32, #tpu.memory_space<vmem>>, vector<8x8xf32>
    %c0_1 = arith.constant 0 : index
    %c0_2 = arith.constant 0 : index
    %c0_3 = arith.constant 0 : index
    %1 = vector.load %arg3[%c0_1, %c0_2, %c0_3] : memref<1x1x8xf32, #tpu.memory_space<vmem>>, vector<1x1x8xf32>
    %2 = vector.shape_cast %1 : vector<1x1x8xf32> to vector<1x8xf32>
    %3 = vector.broadcast %2 : vector<1x8xf32> to vector<8x8xf32>
    %4 = arith.addf %0, %3 : vector<8x8xf32>
    %c0_4 = arith.constant 0 : index
    %c0_5 = arith.constant 0 : index
    %c0_6 = arith.constant 0 : index
    %5 = vector.load %arg1[%c0_4, %c0_5, %c0_6] : memref<1x8x96xbf16, #tpu.memory_space<vmem>>, vector<1x8x8xbf16>
    %6 = vector.shape_cast %5 : vector<1x8x8xbf16> to vector<8x8xbf16>
    %c0_7 = arith.constant 0 : index
    %c0_8 = arith.constant 0 : index
    %c32 = arith.constant 32 : index
    %7 = vector.load %arg1[%c0_7, %c0_8, %c32] : memref<1x8x96xbf16, #tpu.memory_space<vmem>>, vector<1x8x8xbf16>
    %8 = vector.shape_cast %7 : vector<1x8x8xbf16> to vector<8x8xbf16>
    %c0_9 = arith.constant 0 : index
    %c0_10 = arith.constant 0 : index
    %c64 = arith.constant 64 : index
    %9 = vector.load %arg1[%c0_9, %c0_10, %c64] : memref<1x8x96xbf16, #tpu.memory_space<vmem>>, vector<1x8x8xbf16>
    %10 = vector.shape_cast %9 : vector<1x8x8xbf16> to vector<8x8xbf16>
    %cst = arith.constant dense<0.000000e+00> : vector<8x8xf32>
    %11 = tpu.matmul %6, %8, %cst {dimension_numbers = #tpu.dot_dimension_numbers<[1], [1], [0], [0], [0, 0, 1, 0], [], []>} : vector<8x8xbf16>, vector<8x8xbf16>, vector<8x8xf32> -> vector<8x8xf32>
    %cst_11 = arith.constant 0.353553385 : f32
    %12 = vector.broadcast %cst_11 : f32 to vector<8x8xf32>
    %13 = arith.mulf %11, %12 : vector<8x8xf32>
    %14 = arith.addf %13, %4 : vector<8x8xf32>
    %cst_12 = arith.constant dense<0xFF800000> : vector<8xf32>
    %15 = vector.multi_reduction <maximumf>, %14, %cst_12 [1] : vector<8x8xf32> to vector<8xf32>
    %16 = vector.shape_cast %15 : vector<8xf32> to vector<8x1xf32>
    %17 = vector.broadcast %16 : vector<8x1xf32> to vector<8x8xf32>
    %18 = arith.subf %14, %17 : vector<8x8xf32>
    %19 = math.exp %18 : vector<8x8xf32>
    %cst_13 = arith.constant dense<0.000000e+00> : vector<8xf32>
    %20 = vector.multi_reduction <add>, %19, %cst_13 [1] : vector<8x8xf32> to vector<8xf32>
    %21 = vector.shape_cast %20 : vector<8xf32> to vector<8x1xf32>
    %22 = tpu.reciprocal %21 {approx = true} : vector<8x1xf32> -> vector<8x1xf32>
    %23 = vector.broadcast %22 : vector<8x1xf32> to vector<8x8xf32>
    %24 = arith.mulf %19, %23 : vector<8x8xf32>
    %25 = arith.truncf %24 : vector<8x8xf32> to vector<8x8xbf16>
    %cst_14 = arith.constant dense<0.000000e+00> : vector<8x8xf32>
    %26 = tpu.matmul %25, %10, %cst_14 {dimension_numbers = #tpu.dot_dimension_numbers<[1], [0], [0], [1], [0, 0, 1, 1], [], []>} : vector<8x8xbf16>, vector<8x8xbf16>, vector<8x8xf32> -> vector<8x8xf32>
    %c0_15 = arith.constant 0 : index
    %c0_16 = arith.constant 0 : index
    %c8 = arith.constant 8 : index
    %27 = vector.load %arg1[%c0_15, %c0_16, %c8] : memref<1x8x96xbf16, #tpu.memory_space<vmem>>, vector<1x8x8xbf16>
    %28 = vector.shape_cast %27 : vector<1x8x8xbf16> to vector<8x8xbf16>
    %c0_17 = arith.constant 0 : index
    %c0_18 = arith.constant 0 : index
    %c40 = arith.constant 40 : index
    %29 = vector.load %arg1[%c0_17, %c0_18, %c40] : memref<1x8x96xbf16, #tpu.memory_space<vmem>>, vector<1x8x8xbf16>
    %30 = vector.shape_cast %29 : vector<1x8x8xbf16> to vector<8x8xbf16>
    %c0_19 = arith.constant 0 : index
    %c0_20 = arith.constant 0 : index
    %c72 = arith.constant 72 : index
    %31 = vector.load %arg1[%c0_19, %c0_20, %c72] : memref<1x8x96xbf16, #tpu.memory_space<vmem>>, vector<1x8x8xbf16>
    %32 = vector.shape_cast %31 : vector<1x8x8xbf16> to vector<8x8xbf16>
    %cst_21 = arith.constant dense<0.000000e+00> : vector<8x8xf32>
    %33 = tpu.matmul %28, %30, %cst_21 {dimension_numbers = #tpu.dot_dimension_numbers<[1], [1], [0], [0], [0, 0, 1, 0], [], []>} : vector<8x8xbf16>, vector<8x8xbf16>, vector<8x8xf32> -> vector<8x8xf32>
    %cst_22 = arith.constant 0.353553385 : f32
    %34 = vector.broadcast %cst_22 : f32 to vector<8x8xf32>
    %35 = arith.mulf %33, %34 : vector<8x8xf32>
    %36 = arith.addf %35, %4 : vector<8x8xf32>
    %cst_23 = arith.constant dense<0xFF800000> : vector<8xf32>
    %37 = vector.multi_reduction <maximumf>, %36, %cst_23 [1] : vector<8x8xf32> to vector<8xf32>
    %38 = vector.shape_cast %37 : vector<8xf32> to vector<8x1xf32>
    %39 = vector.broadcast %38 : vector<8x1xf32> to vector<8x8xf32>
    %40 = arith.subf %36, %39 : vector<8x8xf32>
    %41 = math.exp %40 : vector<8x8xf32>
    %cst_24 = arith.constant dense<0.000000e+00> : vector<8xf32>
    %42 = vector.multi_reduction <add>, %41, %cst_24 [1] : vector<8x8xf32> to vector<8xf32>
    %43 = vector.shape_cast %42 : vector<8xf32> to vector<8x1xf32>
    %44 = tpu.reciprocal %43 {approx = true} : vector<8x1xf32> -> vector<8x1xf32>
    %45 = vector.broadcast %44 : vector<8x1xf32> to vector<8x8xf32>
    %46 = arith.mulf %41, %45 : vector<8x8xf32>
    %47 = arith.truncf %46 : vector<8x8xf32> to vector<8x8xbf16>
    %cst_25 = arith.constant dense<0.000000e+00> : vector<8x8xf32>
    %48 = tpu.matmul %47, %32, %cst_25 {dimension_numbers = #tpu.dot_dimension_numbers<[1], [0], [0], [1], [0, 0, 1, 1], [], []>} : vector<8x8xbf16>, vector<8x8xbf16>, vector<8x8xf32> -> vector<8x8xf32>
    %c0_26 = arith.constant 0 : index
    %c0_27 = arith.constant 0 : index
    %c16 = arith.constant 16 : index
    %49 = vector.load %arg1[%c0_26, %c0_27, %c16] : memref<1x8x96xbf16, #tpu.memory_space<vmem>>, vector<1x8x8xbf16>
    %50 = vector.shape_cast %49 : vector<1x8x8xbf16> to vector<8x8xbf16>
    %c0_28 = arith.constant 0 : index
    %c0_29 = arith.constant 0 : index
    %c48 = arith.constant 48 : index
    %51 = vector.load %arg1[%c0_28, %c0_29, %c48] : memref<1x8x96xbf16, #tpu.memory_space<vmem>>, vector<1x8x8xbf16>
    %52 = vector.shape_cast %51 : vector<1x8x8xbf16> to vector<8x8xbf16>
    %c0_30 = arith.constant 0 : index
    %c0_31 = arith.constant 0 : index
    %c80 = arith.constant 80 : index
    %53 = vector.load %arg1[%c0_30, %c0_31, %c80] : memref<1x8x96xbf16, #tpu.memory_space<vmem>>, vector<1x8x8xbf16>
    %54 = vector.shape_cast %53 : vector<1x8x8xbf16> to vector<8x8xbf16>
    %cst_32 = arith.constant dense<0.000000e+00> : vector<8x8xf32>
    %55 = tpu.matmul %50, %52, %cst_32 {dimension_numbers = #tpu.dot_dimension_numbers<[1], [1], [0], [0], [0, 0, 1, 0], [], []>} : vector<8x8xbf16>, vector<8x8xbf16>, vector<8x8xf32> -> vector<8x8xf32>
    %cst_33 = arith.constant 0.353553385 : f32
    %56 = vector.broadcast %cst_33 : f32 to vector<8x8xf32>
    %57 = arith.mulf %55, %56 : vector<8x8xf32>
    %58 = arith.addf %57, %4 : vector<8x8xf32>
    %cst_34 = arith.constant dense<0xFF800000> : vector<8xf32>
    %59 = vector.multi_reduction <maximumf>, %58, %cst_34 [1] : vector<8x8xf32> to vector<8xf32>
    %60 = vector.shape_cast %59 : vector<8xf32> to vector<8x1xf32>
    %61 = vector.broadcast %60 : vector<8x1xf32> to vector<8x8xf32>
    %62 = arith.subf %58, %61 : vector<8x8xf32>
    %63 = math.exp %62 : vector<8x8xf32>
    %cst_35 = arith.constant dense<0.000000e+00> : vector<8xf32>
    %64 = vector.multi_reduction <add>, %63, %cst_35 [1] : vector<8x8xf32> to vector<8xf32>
    %65 = vector.shape_cast %64 : vector<8xf32> to vector<8x1xf32>
    %66 = tpu.reciprocal %65 {approx = true} : vector<8x1xf32> -> vector<8x1xf32>
    %67 = vector.broadcast %66 : vector<8x1xf32> to vector<8x8xf32>
    %68 = arith.mulf %63, %67 : vector<8x8xf32>
    %69 = arith.truncf %68 : vector<8x8xf32> to vector<8x8xbf16>
    %cst_36 = arith.constant dense<0.000000e+00> : vector<8x8xf32>
    %70 = tpu.matmul %69, %54, %cst_36 {dimension_numbers = #tpu.dot_dimension_numbers<[1], [0], [0], [1], [0, 0, 1, 1], [], []>} : vector<8x8xbf16>, vector<8x8xbf16>, vector<8x8xf32> -> vector<8x8xf32>
    %c0_37 = arith.constant 0 : index
    %c0_38 = arith.constant 0 : index
    %c24 = arith.constant 24 : index
    %71 = vector.load %arg1[%c0_37, %c0_38, %c24] : memref<1x8x96xbf16, #tpu.memory_space<vmem>>, vector<1x8x8xbf16>
    %72 = vector.shape_cast %71 : vector<1x8x8xbf16> to vector<8x8xbf16>
    %c0_39 = arith.constant 0 : index
    %c0_40 = arith.constant 0 : index
    %c56 = arith.constant 56 : index
    %73 = vector.load %arg1[%c0_39, %c0_40, %c56] : memref<1x8x96xbf16, #tpu.memory_space<vmem>>, vector<1x8x8xbf16>
    %74 = vector.shape_cast %73 : vector<1x8x8xbf16> to vector<8x8xbf16>
    %c0_41 = arith.constant 0 : index
    %c0_42 = arith.constant 0 : index
    %c88 = arith.constant 88 : index
    %75 = vector.load %arg1[%c0_41, %c0_42, %c88] : memref<1x8x96xbf16, #tpu.memory_space<vmem>>, vector<1x8x8xbf16>
    %76 = vector.shape_cast %75 : vector<1x8x8xbf16> to vector<8x8xbf16>
    %cst_43 = arith.constant dense<0.000000e+00> : vector<8x8xf32>
    %77 = tpu.matmul %72, %74, %cst_43 {dimension_numbers = #tpu.dot_dimension_numbers<[1], [1], [0], [0], [0, 0, 1, 0], [], []>} : vector<8x8xbf16>, vector<8x8xbf16>, vector<8x8xf32> -> vector<8x8xf32>
    %cst_44 = arith.constant 0.353553385 : f32
    %78 = vector.broadcast %cst_44 : f32 to vector<8x8xf32>
    %79 = arith.mulf %77, %78 : vector<8x8xf32>
    %80 = arith.addf %79, %4 : vector<8x8xf32>
    %cst_45 = arith.constant dense<0xFF800000> : vector<8xf32>
    %81 = vector.multi_reduction <maximumf>, %80, %cst_45 [1] : vector<8x8xf32> to vector<8xf32>
    %82 = vector.shape_cast %81 : vector<8xf32> to vector<8x1xf32>
    %83 = vector.broadcast %82 : vector<8x1xf32> to vector<8x8xf32>
    %84 = arith.subf %80, %83 : vector<8x8xf32>
    %85 = math.exp %84 : vector<8x8xf32>
    %cst_46 = arith.constant dense<0.000000e+00> : vector<8xf32>
    %86 = vector.multi_reduction <add>, %85, %cst_46 [1] : vector<8x8xf32> to vector<8xf32>
    %87 = vector.shape_cast %86 : vector<8xf32> to vector<8x1xf32>
    %88 = tpu.reciprocal %87 {approx = true} : vector<8x1xf32> -> vector<8x1xf32>
    %89 = vector.broadcast %88 : vector<8x1xf32> to vector<8x8xf32>
    %90 = arith.mulf %85, %89 : vector<8x8xf32>
    %91 = arith.truncf %90 : vector<8x8xf32> to vector<8x8xbf16>
    %cst_47 = arith.constant dense<0.000000e+00> : vector<8x8xf32>
    %92 = tpu.matmul %91, %76, %cst_47 {dimension_numbers = #tpu.dot_dimension_numbers<[1], [0], [0], [1], [0, 0, 1, 1], [], []>} : vector<8x8xbf16>, vector<8x8xbf16>, vector<8x8xf32> -> vector<8x8xf32>
    %93 = tpu.concatenate %26, %48, %70, %92 in 1 : vector<8x8xf32>, vector<8x8xf32>, vector<8x8xf32>, vector<8x8xf32> -> vector<8x32xf32>
    %94 = arith.truncf %93 : vector<8x32xf32> to vector<8x32xbf16>
    %c0_48 = arith.constant 0 : index
    %c0_49 = arith.constant 0 : index
    %c0_50 = arith.constant 0 : index
    %95 = vector.load %arg4[%c0_48, %c0_49, %c0_50] : memref<1x8x32xbf16, #tpu.memory_space<vmem>>, vector<1x8x32xbf16>
    %96 = vector.shape_cast %95 : vector<1x8x32xbf16> to vector<8x32xbf16>
    %97 = vector.shape_cast %94 : vector<8x32xbf16> to vector<1x8x32xbf16>
    tpu.vector_store %arg4[%c0_48, %c0_49, %c0_50], %97 {strides = array<i32>} : memref<1x8x32xbf16, #tpu.memory_space<vmem>>, vector<1x8x32xbf16>,
    return
  }
  func.func @transform_0(%arg0: i32) -> (i32, i32, i32) {
    %c0_i32 = arith.constant 0 : i32
    %c0_i32_0 = arith.constant 0 : i32
    %c0_i32_1 = arith.constant 0 : i32
    return %arg0, %c0_i32, %c0_i32_0 : i32, i32, i32
  }
  func.func @transform_1(%arg0: i32) -> (i32, i32) {
    %c0_i32 = arith.constant 0 : i32
    %c0_i32_0 = arith.constant 0 : i32
    %c0_i32_1 = arith.constant 0 : i32
    return %c0_i32, %c0_i32_0 : i32, i32
  }
  func.func @transform_2(%arg0: i32) -> (i32, i32, i32) {
    %c0_i32 = arith.constant 0 : i32
    %c0_i32_0 = arith.constant 0 : i32
    %c0_i32_1 = arith.constant 0 : i32
    return %arg0, %c0_i32, %c0_i32_0 : i32, i32, i32
  }
  func.func @transform_3(%arg0: i32) -> (i32, i32, i32) {
    %c0_i32 = arith.constant 0 : i32
    %c0_i32_0 = arith.constant 0 : i32
    %c0_i32_1 = arith.constant 0 : i32
    return %arg0, %c0_i32, %c0_i32_0 : i32, i32, i32
  }
}

module attributes {stable_mosaic.version = 11 : i64} {
  func.func @_proj_add_ln_kernel(%arg0: i32, %arg1: memref<16x32xbf16, #tpu.memory_space<vmem>>, %arg2: memref<32x32xbf16, #tpu.memory_space<vmem>>, %arg3: memref<1x32xf32, #tpu.memory_space<vmem>>, %arg4: memref<16x32xf32, #tpu.memory_space<vmem>>, %arg5: memref<1x32xf32, #tpu.memory_space<vmem>>, %arg6: memref<1x32xf32, #tpu.memory_space<vmem>>, %arg7: memref<16x32xf32, #tpu.memory_space<vmem>>) attributes {dimension_semantics = [#tpu.dimension_semantics<parallel>], iteration_bounds = array<i64: 1>, scalar_prefetch = 0 : i64, scratch_operands = 0 : i64, tpu.core_type = #tpu.core_type<tc>, window_params = [{transform_indices = @transform_0, window_bounds = array<i64: 16, 32>}, {pipeline_mode = #tpu.pipeline_mode<synchronous>, transform_indices = @transform_1, window_bounds = array<i64: 32, 32>}, {pipeline_mode = #tpu.pipeline_mode<synchronous>, transform_indices = @transform_2, window_bounds = array<i64: 1, 32>}, {transform_indices = @transform_3, window_bounds = array<i64: 16, 32>}, {pipeline_mode = #tpu.pipeline_mode<synchronous>, transform_indices = @transform_4, window_bounds = array<i64: 1, 32>}, {pipeline_mode = #tpu.pipeline_mode<synchronous>, transform_indices = @transform_5, window_bounds = array<i64: 1, 32>}, {transform_indices = @transform_6, window_bounds = array<i64: 16, 32>}]} {
    %c0 = arith.constant 0 : index
    %c0_0 = arith.constant 0 : index
    %0 = vector.load %arg1[%c0, %c0_0] : memref<16x32xbf16, #tpu.memory_space<vmem>>, vector<16x32xbf16>
    %c0_1 = arith.constant 0 : index
    %c0_2 = arith.constant 0 : index
    %1 = vector.load %arg2[%c0_1, %c0_2] : memref<32x32xbf16, #tpu.memory_space<vmem>>, vector<32x32xbf16>
    %cst = arith.constant dense<0.000000e+00> : vector<16x32xf32>
    %2 = tpu.matmul %0, %1, %cst {dimension_numbers = #tpu.dot_dimension_numbers<[1], [0], [0], [1], [0, 0, 1, 1], [], []>} : vector<16x32xbf16>, vector<32x32xbf16>, vector<16x32xf32> -> vector<16x32xf32>
    %c0_3 = arith.constant 0 : index
    %c0_4 = arith.constant 0 : index
    %3 = vector.load %arg3[%c0_3, %c0_4] : memref<1x32xf32, #tpu.memory_space<vmem>>, vector<1x32xf32>
    %4 = vector.broadcast %3 : vector<1x32xf32> to vector<16x32xf32>
    %5 = arith.addf %2, %4 : vector<16x32xf32>
    %c0_5 = arith.constant 0 : index
    %c0_6 = arith.constant 0 : index
    %6 = vector.load %arg4[%c0_5, %c0_6] : memref<16x32xf32, #tpu.memory_space<vmem>>, vector<16x32xf32>
    %7 = arith.addf %5, %6 : vector<16x32xf32>
    %c0_7 = arith.constant 0 : index
    %c0_8 = arith.constant 0 : index
    %8 = vector.load %arg5[%c0_7, %c0_8] : memref<1x32xf32, #tpu.memory_space<vmem>>, vector<1x32xf32>
    %c0_9 = arith.constant 0 : index
    %c0_10 = arith.constant 0 : index
    %9 = vector.load %arg6[%c0_9, %c0_10] : memref<1x32xf32, #tpu.memory_space<vmem>>, vector<1x32xf32>
    %cst_11 = arith.constant dense<0.000000e+00> : vector<16xf32>
    %10 = vector.multi_reduction <add>, %7, %cst_11 [1] : vector<16x32xf32> to vector<16xf32>
    %11 = vector.shape_cast %10 : vector<16xf32> to vector<16x1xf32>
    %cst_12 = arith.constant 3.200000e+01 : f32
    %12 = vector.broadcast %cst_12 : f32 to vector<16x1xf32>
    %13 = arith.divf %11, %12 : vector<16x1xf32>
    %14 = vector.broadcast %13 : vector<16x1xf32> to vector<16x32xf32>
    %15 = arith.subf %7, %14 : vector<16x32xf32>
    %16 = arith.mulf %15, %15 : vector<16x32xf32>
    %cst_13 = arith.constant dense<0.000000e+00> : vector<16xf32>
    %17 = vector.multi_reduction <add>, %16, %cst_13 [1] : vector<16x32xf32> to vector<16xf32>
    %18 = vector.shape_cast %17 : vector<16xf32> to vector<16x1xf32>
    %cst_14 = arith.constant 3.200000e+01 : f32
    %19 = vector.broadcast %cst_14 : f32 to vector<16x1xf32>
    %20 = arith.divf %18, %19 : vector<16x1xf32>
    %cst_15 = arith.constant 9.99999974E-6 : f32
    %21 = vector.broadcast %cst_15 : f32 to vector<16x1xf32>
    %22 = arith.addf %20, %21 : vector<16x1xf32>
    %23 = math.rsqrt %22 : vector<16x1xf32>
    %24 = vector.broadcast %23 : vector<16x1xf32> to vector<16x32xf32>
    %25 = arith.mulf %15, %24 : vector<16x32xf32>
    %26 = vector.broadcast %8 : vector<1x32xf32> to vector<16x32xf32>
    %27 = arith.mulf %25, %26 : vector<16x32xf32>
    %28 = vector.broadcast %9 : vector<1x32xf32> to vector<16x32xf32>
    %29 = arith.addf %27, %28 : vector<16x32xf32>
    %c0_16 = arith.constant 0 : index
    %c0_17 = arith.constant 0 : index
    %30 = vector.load %arg7[%c0_16, %c0_17] : memref<16x32xf32, #tpu.memory_space<vmem>>, vector<16x32xf32>
    tpu.vector_store %arg7[%c0_16, %c0_17], %29 {strides = array<i32>} : memref<16x32xf32, #tpu.memory_space<vmem>>, vector<16x32xf32>,
    return
  }
  func.func @transform_0(%arg0: i32) -> (i32, i32) {
    %c0_i32 = arith.constant 0 : i32
    %c0_i32_0 = arith.constant 0 : i32
    return %arg0, %c0_i32 : i32, i32
  }
  func.func @transform_1(%arg0: i32) -> (i32, i32) {
    %c0_i32 = arith.constant 0 : i32
    %c0_i32_0 = arith.constant 0 : i32
    %c0_i32_1 = arith.constant 0 : i32
    return %c0_i32, %c0_i32_0 : i32, i32
  }
  func.func @transform_2(%arg0: i32) -> (i32, i32) {
    %c0_i32 = arith.constant 0 : i32
    %c0_i32_0 = arith.constant 0 : i32
    %c0_i32_1 = arith.constant 0 : i32
    return %c0_i32, %c0_i32_0 : i32, i32
  }
  func.func @transform_3(%arg0: i32) -> (i32, i32) {
    %c0_i32 = arith.constant 0 : i32
    %c0_i32_0 = arith.constant 0 : i32
    return %arg0, %c0_i32 : i32, i32
  }
  func.func @transform_4(%arg0: i32) -> (i32, i32) {
    %c0_i32 = arith.constant 0 : i32
    %c0_i32_0 = arith.constant 0 : i32
    %c0_i32_1 = arith.constant 0 : i32
    return %c0_i32, %c0_i32_0 : i32, i32
  }
  func.func @transform_5(%arg0: i32) -> (i32, i32) {
    %c0_i32 = arith.constant 0 : i32
    %c0_i32_0 = arith.constant 0 : i32
    %c0_i32_1 = arith.constant 0 : i32
    return %c0_i32, %c0_i32_0 : i32, i32
  }
  func.func @transform_6(%arg0: i32) -> (i32, i32) {
    %c0_i32 = arith.constant 0 : i32
    %c0_i32_0 = arith.constant 0 : i32
    return %arg0, %c0_i32 : i32, i32
  }
}

module attributes {stable_mosaic.version = 11 : i64} {
  func.func @_ffn_add_ln_kernel(%arg0: i32, %arg1: memref<16x32xf32, #tpu.memory_space<vmem>>, %arg2: memref<32x64xbf16, #tpu.memory_space<vmem>>, %arg3: memref<1x64xf32, #tpu.memory_space<vmem>>, %arg4: memref<64x32xbf16, #tpu.memory_space<vmem>>, %arg5: memref<1x32xf32, #tpu.memory_space<vmem>>, %arg6: memref<1x32xf32, #tpu.memory_space<vmem>>, %arg7: memref<1x32xf32, #tpu.memory_space<vmem>>, %arg8: memref<16x32xf32, #tpu.memory_space<vmem>>) attributes {dimension_semantics = [#tpu.dimension_semantics<parallel>], iteration_bounds = array<i64: 1>, scalar_prefetch = 0 : i64, scratch_operands = 0 : i64, tpu.core_type = #tpu.core_type<tc>, window_params = [{transform_indices = @transform_0, window_bounds = array<i64: 16, 32>}, {pipeline_mode = #tpu.pipeline_mode<synchronous>, transform_indices = @transform_1, window_bounds = array<i64: 32, 64>}, {pipeline_mode = #tpu.pipeline_mode<synchronous>, transform_indices = @transform_2, window_bounds = array<i64: 1, 64>}, {pipeline_mode = #tpu.pipeline_mode<synchronous>, transform_indices = @transform_3, window_bounds = array<i64: 64, 32>}, {pipeline_mode = #tpu.pipeline_mode<synchronous>, transform_indices = @transform_4, window_bounds = array<i64: 1, 32>}, {pipeline_mode = #tpu.pipeline_mode<synchronous>, transform_indices = @transform_5, window_bounds = array<i64: 1, 32>}, {pipeline_mode = #tpu.pipeline_mode<synchronous>, transform_indices = @transform_6, window_bounds = array<i64: 1, 32>}, {transform_indices = @transform_7, window_bounds = array<i64: 16, 32>}]} {
    %c0 = arith.constant 0 : index
    %c0_0 = arith.constant 0 : index
    %0 = vector.load %arg1[%c0, %c0_0] : memref<16x32xf32, #tpu.memory_space<vmem>>, vector<16x32xf32>
    %1 = arith.truncf %0 : vector<16x32xf32> to vector<16x32xbf16>
    %cst = arith.constant 0.000000e+00 : f32
    %2 = vector.broadcast %cst : f32 to vector<16x32xf32>
    %c0_1 = arith.constant 0 : index
    %c0_2 = arith.constant 0 : index
    %3 = vector.load %arg2[%c0_1, %c0_2] : memref<32x64xbf16, #tpu.memory_space<vmem>>, vector<32x64xbf16>
    %cst_3 = arith.constant dense<0.000000e+00> : vector<16x64xf32>
    %4 = tpu.matmul %1, %3, %cst_3 {dimension_numbers = #tpu.dot_dimension_numbers<[1], [0], [0], [1], [0, 0, 1, 1], [], []>} : vector<16x32xbf16>, vector<32x64xbf16>, vector<16x64xf32> -> vector<16x64xf32>
    %c0_4 = arith.constant 0 : index
    %c0_5 = arith.constant 0 : index
    %5 = vector.load %arg3[%c0_4, %c0_5] : memref<1x64xf32, #tpu.memory_space<vmem>>, vector<1x64xf32>
    %6 = vector.broadcast %5 : vector<1x64xf32> to vector<16x64xf32>
    %7 = arith.addf %4, %6 : vector<16x64xf32>
    %cst_6 = arith.constant 0.000000e+00 : f32
    %8 = vector.broadcast %cst_6 : f32 to vector<16x64xf32>
    %9 = arith.maximumf %7, %8 : vector<16x64xf32>
    %10 = arith.truncf %9 : vector<16x64xf32> to vector<16x64xbf16>
    %c0_7 = arith.constant 0 : index
    %c0_8 = arith.constant 0 : index
    %11 = vector.load %arg4[%c0_7, %c0_8] : memref<64x32xbf16, #tpu.memory_space<vmem>>, vector<64x32xbf16>
    %cst_9 = arith.constant dense<0.000000e+00> : vector<16x32xf32>
    %12 = tpu.matmul %10, %11, %cst_9 {dimension_numbers = #tpu.dot_dimension_numbers<[1], [0], [0], [1], [0, 0, 1, 1], [], []>} : vector<16x64xbf16>, vector<64x32xbf16>, vector<16x32xf32> -> vector<16x32xf32>
    %13 = arith.addf %2, %12 : vector<16x32xf32>
    %14 = arith.addf %0, %13 : vector<16x32xf32>
    %c0_10 = arith.constant 0 : index
    %c0_11 = arith.constant 0 : index
    %15 = vector.load %arg5[%c0_10, %c0_11] : memref<1x32xf32, #tpu.memory_space<vmem>>, vector<1x32xf32>
    %16 = vector.broadcast %15 : vector<1x32xf32> to vector<16x32xf32>
    %17 = arith.addf %14, %16 : vector<16x32xf32>
    %c0_12 = arith.constant 0 : index
    %c0_13 = arith.constant 0 : index
    %18 = vector.load %arg6[%c0_12, %c0_13] : memref<1x32xf32, #tpu.memory_space<vmem>>, vector<1x32xf32>
    %c0_14 = arith.constant 0 : index
    %c0_15 = arith.constant 0 : index
    %19 = vector.load %arg7[%c0_14, %c0_15] : memref<1x32xf32, #tpu.memory_space<vmem>>, vector<1x32xf32>
    %cst_16 = arith.constant dense<0.000000e+00> : vector<16xf32>
    %20 = vector.multi_reduction <add>, %17, %cst_16 [1] : vector<16x32xf32> to vector<16xf32>
    %21 = vector.shape_cast %20 : vector<16xf32> to vector<16x1xf32>
    %cst_17 = arith.constant 3.200000e+01 : f32
    %22 = vector.broadcast %cst_17 : f32 to vector<16x1xf32>
    %23 = arith.divf %21, %22 : vector<16x1xf32>
    %24 = vector.broadcast %23 : vector<16x1xf32> to vector<16x32xf32>
    %25 = arith.subf %17, %24 : vector<16x32xf32>
    %26 = arith.mulf %25, %25 : vector<16x32xf32>
    %cst_18 = arith.constant dense<0.000000e+00> : vector<16xf32>
    %27 = vector.multi_reduction <add>, %26, %cst_18 [1] : vector<16x32xf32> to vector<16xf32>
    %28 = vector.shape_cast %27 : vector<16xf32> to vector<16x1xf32>
    %cst_19 = arith.constant 3.200000e+01 : f32
    %29 = vector.broadcast %cst_19 : f32 to vector<16x1xf32>
    %30 = arith.divf %28, %29 : vector<16x1xf32>
    %cst_20 = arith.constant 9.99999974E-6 : f32
    %31 = vector.broadcast %cst_20 : f32 to vector<16x1xf32>
    %32 = arith.addf %30, %31 : vector<16x1xf32>
    %33 = math.rsqrt %32 : vector<16x1xf32>
    %34 = vector.broadcast %33 : vector<16x1xf32> to vector<16x32xf32>
    %35 = arith.mulf %25, %34 : vector<16x32xf32>
    %36 = vector.broadcast %18 : vector<1x32xf32> to vector<16x32xf32>
    %37 = arith.mulf %35, %36 : vector<16x32xf32>
    %38 = vector.broadcast %19 : vector<1x32xf32> to vector<16x32xf32>
    %39 = arith.addf %37, %38 : vector<16x32xf32>
    %c0_21 = arith.constant 0 : index
    %c0_22 = arith.constant 0 : index
    %40 = vector.load %arg8[%c0_21, %c0_22] : memref<16x32xf32, #tpu.memory_space<vmem>>, vector<16x32xf32>
    tpu.vector_store %arg8[%c0_21, %c0_22], %39 {strides = array<i32>} : memref<16x32xf32, #tpu.memory_space<vmem>>, vector<16x32xf32>,
    return
  }
  func.func @transform_0(%arg0: i32) -> (i32, i32) {
    %c0_i32 = arith.constant 0 : i32
    %c0_i32_0 = arith.constant 0 : i32
    return %arg0, %c0_i32 : i32, i32
  }
  func.func @transform_1(%arg0: i32) -> (i32, i32) {
    %c0_i32 = arith.constant 0 : i32
    %c0_i32_0 = arith.constant 0 : i32
    %c0_i32_1 = arith.constant 0 : i32
    return %c0_i32, %c0_i32_0 : i32, i32
  }
  func.func @transform_2(%arg0: i32) -> (i32, i32) {
    %c0_i32 = arith.constant 0 : i32
    %c0_i32_0 = arith.constant 0 : i32
    %c0_i32_1 = arith.constant 0 : i32
    return %c0_i32, %c0_i32_0 : i32, i32
  }
  func.func @transform_3(%arg0: i32) -> (i32, i32) {
    %c0_i32 = arith.constant 0 : i32
    %c0_i32_0 = arith.constant 0 : i32
    %c0_i32_1 = arith.constant 0 : i32
    return %c0_i32, %c0_i32_0 : i32, i32
  }
  func.func @transform_4(%arg0: i32) -> (i32, i32) {
    %c0_i32 = arith.constant 0 : i32
    %c0_i32_0 = arith.constant 0 : i32
    %c0_i32_1 = arith.constant 0 : i32
    return %c0_i32, %c0_i32_0 : i32, i32
  }
  func.func @transform_5(%arg0: i32) -> (i32, i32) {
    %c0_i32 = arith.constant 0 : i32
    %c0_i32_0 = arith.constant 0 : i32
    %c0_i32_1 = arith.constant 0 : i32
    return %c0_i32, %c0_i32_0 : i32, i32
  }
  func.func @transform_6(%arg0: i32) -> (i32, i32) {
    %c0_i32 = arith.constant 0 : i32
    %c0_i32_0 = arith.constant 0 : i32
    %c0_i32_1 = arith.constant 0 : i32
    return %c0_i32, %c0_i32_0 : i32, i32
  }
  func.func @transform_7(%arg0: i32) -> (i32, i32) {
    %c0_i32 = arith.constant 0 : i32
    %c0_i32_0 = arith.constant 0 : i32
    return %arg0, %c0_i32 : i32, i32
  }
}

module attributes {stable_mosaic.version = 11 : i64} {
  func.func @_ln_kernel(%arg0: i32, %arg1: memref<16x32xf32, #tpu.memory_space<vmem>>, %arg2: memref<1x32xf32, #tpu.memory_space<vmem>>, %arg3: memref<1x32xf32, #tpu.memory_space<vmem>>, %arg4: memref<16x32xf32, #tpu.memory_space<vmem>>) attributes {dimension_semantics = [#tpu.dimension_semantics<parallel>], iteration_bounds = array<i64: 1>, scalar_prefetch = 0 : i64, scratch_operands = 0 : i64, tpu.core_type = #tpu.core_type<tc>, window_params = [{transform_indices = @transform_0, window_bounds = array<i64: 16, 32>}, {pipeline_mode = #tpu.pipeline_mode<synchronous>, transform_indices = @transform_1, window_bounds = array<i64: 1, 32>}, {pipeline_mode = #tpu.pipeline_mode<synchronous>, transform_indices = @transform_2, window_bounds = array<i64: 1, 32>}, {transform_indices = @transform_3, window_bounds = array<i64: 16, 32>}]} {
    %c0 = arith.constant 0 : index
    %c0_0 = arith.constant 0 : index
    %0 = vector.load %arg1[%c0, %c0_0] : memref<16x32xf32, #tpu.memory_space<vmem>>, vector<16x32xf32>
    %c0_1 = arith.constant 0 : index
    %c0_2 = arith.constant 0 : index
    %1 = vector.load %arg2[%c0_1, %c0_2] : memref<1x32xf32, #tpu.memory_space<vmem>>, vector<1x32xf32>
    %c0_3 = arith.constant 0 : index
    %c0_4 = arith.constant 0 : index
    %2 = vector.load %arg3[%c0_3, %c0_4] : memref<1x32xf32, #tpu.memory_space<vmem>>, vector<1x32xf32>
    %cst = arith.constant dense<0.000000e+00> : vector<16xf32>
    %3 = vector.multi_reduction <add>, %0, %cst [1] : vector<16x32xf32> to vector<16xf32>
    %4 = vector.shape_cast %3 : vector<16xf32> to vector<16x1xf32>
    %cst_5 = arith.constant 3.200000e+01 : f32
    %5 = vector.broadcast %cst_5 : f32 to vector<16x1xf32>
    %6 = arith.divf %4, %5 : vector<16x1xf32>
    %7 = vector.broadcast %6 : vector<16x1xf32> to vector<16x32xf32>
    %8 = arith.subf %0, %7 : vector<16x32xf32>
    %9 = arith.mulf %8, %8 : vector<16x32xf32>
    %cst_6 = arith.constant dense<0.000000e+00> : vector<16xf32>
    %10 = vector.multi_reduction <add>, %9, %cst_6 [1] : vector<16x32xf32> to vector<16xf32>
    %11 = vector.shape_cast %10 : vector<16xf32> to vector<16x1xf32>
    %cst_7 = arith.constant 3.200000e+01 : f32
    %12 = vector.broadcast %cst_7 : f32 to vector<16x1xf32>
    %13 = arith.divf %11, %12 : vector<16x1xf32>
    %cst_8 = arith.constant 9.99999974E-6 : f32
    %14 = vector.broadcast %cst_8 : f32 to vector<16x1xf32>
    %15 = arith.addf %13, %14 : vector<16x1xf32>
    %16 = math.rsqrt %15 : vector<16x1xf32>
    %17 = vector.broadcast %16 : vector<16x1xf32> to vector<16x32xf32>
    %18 = arith.mulf %8, %17 : vector<16x32xf32>
    %19 = vector.broadcast %1 : vector<1x32xf32> to vector<16x32xf32>
    %20 = arith.mulf %18, %19 : vector<16x32xf32>
    %21 = vector.broadcast %2 : vector<1x32xf32> to vector<16x32xf32>
    %22 = arith.addf %20, %21 : vector<16x32xf32>
    %c0_9 = arith.constant 0 : index
    %c0_10 = arith.constant 0 : index
    %23 = vector.load %arg4[%c0_9, %c0_10] : memref<16x32xf32, #tpu.memory_space<vmem>>, vector<16x32xf32>
    tpu.vector_store %arg4[%c0_9, %c0_10], %22 {strides = array<i32>} : memref<16x32xf32, #tpu.memory_space<vmem>>, vector<16x32xf32>,
    return
  }
  func.func @transform_0(%arg0: i32) -> (i32, i32) {
    %c0_i32 = arith.constant 0 : i32
    %c0_i32_0 = arith.constant 0 : i32
    return %arg0, %c0_i32 : i32, i32
  }
  func.func @transform_1(%arg0: i32) -> (i32, i32) {
    %c0_i32 = arith.constant 0 : i32
    %c0_i32_0 = arith.constant 0 : i32
    %c0_i32_1 = arith.constant 0 : i32
    return %c0_i32, %c0_i32_0 : i32, i32
  }
  func.func @transform_2(%arg0: i32) -> (i32, i32) {
    %c0_i32 = arith.constant 0 : i32
    %c0_i32_0 = arith.constant 0 : i32
    %c0_i32_1 = arith.constant 0 : i32
    return %c0_i32, %c0_i32_0 : i32, i32
  }
  func.func @transform_3(%arg0: i32) -> (i32, i32) {
    %c0_i32 = arith.constant 0 : i32
    %c0_i32_0 = arith.constant 0 : i32
    return %arg0, %c0_i32 : i32, i32
  }
}

module attributes {stable_mosaic.version = 11 : i64} {
  func.func @_linear_kernel(%arg0: i32, %arg1: i32, %arg2: memref<16x32xf32, #tpu.memory_space<vmem>>, %arg3: memref<32x64xbf16, #tpu.memory_space<vmem>>, %arg4: memref<1x64xf32, #tpu.memory_space<vmem>>, %arg5: memref<16x64xbf16, #tpu.memory_space<vmem>>) attributes {dimension_semantics = [#tpu.dimension_semantics<parallel>, #tpu.dimension_semantics<parallel>], iteration_bounds = array<i64: 1, 1>, scalar_prefetch = 0 : i64, scratch_operands = 0 : i64, tpu.core_type = #tpu.core_type<tc>, window_params = [{transform_indices = @transform_0, window_bounds = array<i64: 16, 32>}, {transform_indices = @transform_1, window_bounds = array<i64: 32, 64>}, {transform_indices = @transform_2, window_bounds = array<i64: 1, 64>}, {transform_indices = @transform_3, window_bounds = array<i64: 16, 64>}]} {
    %c0 = arith.constant 0 : index
    %c0_0 = arith.constant 0 : index
    %0 = vector.load %arg2[%c0, %c0_0] : memref<16x32xf32, #tpu.memory_space<vmem>>, vector<16x32xf32>
    %1 = arith.truncf %0 : vector<16x32xf32> to vector<16x32xbf16>
    %c0_1 = arith.constant 0 : index
    %c0_2 = arith.constant 0 : index
    %2 = vector.load %arg3[%c0_1, %c0_2] : memref<32x64xbf16, #tpu.memory_space<vmem>>, vector<32x64xbf16>
    %cst = arith.constant dense<0.000000e+00> : vector<16x64xf32>
    %3 = tpu.matmul %1, %2, %cst {dimension_numbers = #tpu.dot_dimension_numbers<[1], [0], [0], [1], [0, 0, 1, 1], [], []>} : vector<16x32xbf16>, vector<32x64xbf16>, vector<16x64xf32> -> vector<16x64xf32>
    %c0_3 = arith.constant 0 : index
    %c0_4 = arith.constant 0 : index
    %4 = vector.load %arg4[%c0_3, %c0_4] : memref<1x64xf32, #tpu.memory_space<vmem>>, vector<1x64xf32>
    %5 = vector.broadcast %4 : vector<1x64xf32> to vector<16x64xf32>
    %6 = arith.addf %3, %5 : vector<16x64xf32>
    %7 = arith.truncf %6 : vector<16x64xf32> to vector<16x64xbf16>
    %c0_5 = arith.constant 0 : index
    %c0_6 = arith.constant 0 : index
    %8 = vector.load %arg5[%c0_5, %c0_6] : memref<16x64xbf16, #tpu.memory_space<vmem>>, vector<16x64xbf16>
    tpu.vector_store %arg5[%c0_5, %c0_6], %7 {strides = array<i32>} : memref<16x64xbf16, #tpu.memory_space<vmem>>, vector<16x64xbf16>,
    return
  }
  func.func @transform_0(%arg0: i32, %arg1: i32) -> (i32, i32) {
    %c0_i32 = arith.constant 0 : i32
    %c0_i32_0 = arith.constant 0 : i32
    return %arg0, %c0_i32 : i32, i32
  }
  func.func @transform_1(%arg0: i32, %arg1: i32) -> (i32, i32) {
    %c0_i32 = arith.constant 0 : i32
    %c0_i32_0 = arith.constant 0 : i32
    return %c0_i32, %arg1 : i32, i32
  }
  func.func @transform_2(%arg0: i32, %arg1: i32) -> (i32, i32) {
    %c0_i32 = arith.constant 0 : i32
    %c0_i32_0 = arith.constant 0 : i32
    return %c0_i32, %arg1 : i32, i32
  }
  func.func @transform_3(%arg0: i32, %arg1: i32) -> (i32, i32) {
    %c0_i32 = arith.constant 0 : i32
    return %arg0, %arg1 : i32, i32
  }
}

module attributes {stable_mosaic.version = 11 : i64} {
  func.func @_linear_kernel(%arg0: i32, %arg1: i32, %arg2: memref<16x32xf32, #tpu.memory_space<vmem>>, %arg3: memref<32x32xbf16, #tpu.memory_space<vmem>>, %arg4: memref<1x32xf32, #tpu.memory_space<vmem>>, %arg5: memref<16x32xbf16, #tpu.memory_space<vmem>>) attributes {dimension_semantics = [#tpu.dimension_semantics<parallel>, #tpu.dimension_semantics<parallel>], iteration_bounds = array<i64: 1, 1>, scalar_prefetch = 0 : i64, scratch_operands = 0 : i64, tpu.core_type = #tpu.core_type<tc>, window_params = [{transform_indices = @transform_0, window_bounds = array<i64: 16, 32>}, {transform_indices = @transform_1, window_bounds = array<i64: 32, 32>}, {transform_indices = @transform_2, window_bounds = array<i64: 1, 32>}, {transform_indices = @transform_3, window_bounds = array<i64: 16, 32>}]} {
    %c0 = arith.constant 0 : index
    %c0_0 = arith.constant 0 : index
    %0 = vector.load %arg2[%c0, %c0_0] : memref<16x32xf32, #tpu.memory_space<vmem>>, vector<16x32xf32>
    %1 = arith.truncf %0 : vector<16x32xf32> to vector<16x32xbf16>
    %c0_1 = arith.constant 0 : index
    %c0_2 = arith.constant 0 : index
    %2 = vector.load %arg3[%c0_1, %c0_2] : memref<32x32xbf16, #tpu.memory_space<vmem>>, vector<32x32xbf16>
    %cst = arith.constant dense<0.000000e+00> : vector<16x32xf32>
    %3 = tpu.matmul %1, %2, %cst {dimension_numbers = #tpu.dot_dimension_numbers<[1], [0], [0], [1], [0, 0, 1, 1], [], []>} : vector<16x32xbf16>, vector<32x32xbf16>, vector<16x32xf32> -> vector<16x32xf32>
    %c0_3 = arith.constant 0 : index
    %c0_4 = arith.constant 0 : index
    %4 = vector.load %arg4[%c0_3, %c0_4] : memref<1x32xf32, #tpu.memory_space<vmem>>, vector<1x32xf32>
    %5 = vector.broadcast %4 : vector<1x32xf32> to vector<16x32xf32>
    %6 = arith.addf %3, %5 : vector<16x32xf32>
    %7 = arith.truncf %6 : vector<16x32xf32> to vector<16x32xbf16>
    %c0_5 = arith.constant 0 : index
    %c0_6 = arith.constant 0 : index
    %8 = vector.load %arg5[%c0_5, %c0_6] : memref<16x32xbf16, #tpu.memory_space<vmem>>, vector<16x32xbf16>
    tpu.vector_store %arg5[%c0_5, %c0_6], %7 {strides = array<i32>} : memref<16x32xbf16, #tpu.memory_space<vmem>>, vector<16x32xbf16>,
    return
  }
  func.func @transform_0(%arg0: i32, %arg1: i32) -> (i32, i32) {
    %c0_i32 = arith.constant 0 : i32
    %c0_i32_0 = arith.constant 0 : i32
    return %arg0, %c0_i32 : i32, i32
  }
  func.func @transform_1(%arg0: i32, %arg1: i32) -> (i32, i32) {
    %c0_i32 = arith.constant 0 : i32
    %c0_i32_0 = arith.constant 0 : i32
    return %c0_i32, %arg1 : i32, i32
  }
  func.func @transform_2(%arg0: i32, %arg1: i32) -> (i32, i32) {
    %c0_i32 = arith.constant 0 : i32
    %c0_i32_0 = arith.constant 0 : i32
    return %c0_i32, %arg1 : i32, i32
  }
  func.func @transform_3(%arg0: i32, %arg1: i32) -> (i32, i32) {
    %c0_i32 = arith.constant 0 : i32
    return %arg0, %arg1 : i32, i32
  }
}

module attributes {stable_mosaic.version = 11 : i64} {
  func.func @_cross_attn_kernel(%arg0: i32, %arg1: memref<1x8x32xbf16, #tpu.memory_space<vmem>>, %arg2: memref<1x8x64xbf16, #tpu.memory_space<vmem>>, %arg3: memref<8x8xf32, #tpu.memory_space<vmem>>, %arg4: memref<1x1x8xf32, #tpu.memory_space<vmem>>, %arg5: memref<1x8x32xbf16, #tpu.memory_space<vmem>>) attributes {dimension_semantics = [#tpu.dimension_semantics<parallel>], iteration_bounds = array<i64: 2>, scalar_prefetch = 0 : i64, scratch_operands = 0 : i64, tpu.core_type = #tpu.core_type<tc>, window_params = [{transform_indices = @transform_0, window_bounds = array<i64: 1, 8, 32>}, {transform_indices = @transform_1, window_bounds = array<i64: 1, 8, 64>}, {pipeline_mode = #tpu.pipeline_mode<synchronous>, transform_indices = @transform_2, window_bounds = array<i64: 8, 8>}, {transform_indices = @transform_3, window_bounds = array<i64: 1, 1, 8>}, {transform_indices = @transform_4, window_bounds = array<i64: 1, 8, 32>}]} {
    %c0 = arith.constant 0 : index
    %c0_0 = arith.constant 0 : index
    %0 = vector.load %arg3[%c0, %c0_0] : memref<8x8xf32, #tpu.memory_space<vmem>>, vector<8x8xf32>
    %c0_1 = arith.constant 0 : index
    %c0_2 = arith.constant 0 : index
    %c0_3 = arith.constant 0 : index
    %1 = vector.load %arg4[%c0_1, %c0_2, %c0_3] : memref<1x1x8xf32, #tpu.memory_space<vmem>>, vector<1x1x8xf32>
    %2 = vector.shape_cast %1 : vector<1x1x8xf32> to vector<1x8xf32>
    %3 = vector.broadcast %2 : vector<1x8xf32> to vector<8x8xf32>
    %4 = arith.addf %0, %3 : vector<8x8xf32>
    %c0_4 = arith.constant 0 : index
    %c0_5 = arith.constant 0 : index
    %c0_6 = arith.constant 0 : index
    %5 = vector.load %arg1[%c0_4, %c0_5, %c0_6] : memref<1x8x32xbf16, #tpu.memory_space<vmem>>, vector<1x8x8xbf16>
    %6 = vector.shape_cast %5 : vector<1x8x8xbf16> to vector<8x8xbf16>
    %c0_7 = arith.constant 0 : index
    %c0_8 = arith.constant 0 : index
    %c0_9 = arith.constant 0 : index
    %7 = vector.load %arg2[%c0_7, %c0_8, %c0_9] : memref<1x8x64xbf16, #tpu.memory_space<vmem>>, vector<1x8x8xbf16>
    %8 = vector.shape_cast %7 : vector<1x8x8xbf16> to vector<8x8xbf16>
    %c0_10 = arith.constant 0 : index
    %c0_11 = arith.constant 0 : index
    %c32 = arith.constant 32 : index
    %9 = vector.load %arg2[%c0_10, %c0_11, %c32] : memref<1x8x64xbf16, #tpu.memory_space<vmem>>, vector<1x8x8xbf16>
    %10 = vector.shape_cast %9 : vector<1x8x8xbf16> to vector<8x8xbf16>
    %cst = arith.constant dense<0.000000e+00> : vector<8x8xf32>
    %11 = tpu.matmul %6, %8, %cst {dimension_numbers = #tpu.dot_dimension_numbers<[1], [1], [0], [0], [0, 0, 1, 0], [], []>} : vector<8x8xbf16>, vector<8x8xbf16>, vector<8x8xf32> -> vector<8x8xf32>
    %cst_12 = arith.constant 0.353553385 : f32
    %12 = vector.broadcast %cst_12 : f32 to vector<8x8xf32>
    %13 = arith.mulf %11, %12 : vector<8x8xf32>
    %14 = arith.addf %13, %4 : vector<8x8xf32>
    %cst_13 = arith.constant dense<0xFF800000> : vector<8xf32>
    %15 = vector.multi_reduction <maximumf>, %14, %cst_13 [1] : vector<8x8xf32> to vector<8xf32>
    %16 = vector.shape_cast %15 : vector<8xf32> to vector<8x1xf32>
    %17 = vector.broadcast %16 : vector<8x1xf32> to vector<8x8xf32>
    %18 = arith.subf %14, %17 : vector<8x8xf32>
    %19 = math.exp %18 : vector<8x8xf32>
    %cst_14 = arith.constant dense<0.000000e+00> : vector<8xf32>
    %20 = vector.multi_reduction <add>, %19, %cst_14 [1] : vector<8x8xf32> to vector<8xf32>
    %21 = vector.shape_cast %20 : vector<8xf32> to vector<8x1xf32>
    %22 = tpu.reciprocal %21 {approx = true} : vector<8x1xf32> -> vector<8x1xf32>
    %23 = vector.broadcast %22 : vector<8x1xf32> to vector<8x8xf32>
    %24 = arith.mulf %19, %23 : vector<8x8xf32>
    %25 = arith.truncf %24 : vector<8x8xf32> to vector<8x8xbf16>
    %cst_15 = arith.constant dense<0.000000e+00> : vector<8x8xf32>
    %26 = tpu.matmul %25, %10, %cst_15 {dimension_numbers = #tpu.dot_dimension_numbers<[1], [0], [0], [1], [0, 0, 1, 1], [], []>} : vector<8x8xbf16>, vector<8x8xbf16>, vector<8x8xf32> -> vector<8x8xf32>
    %c0_16 = arith.constant 0 : index
    %c0_17 = arith.constant 0 : index
    %c8 = arith.constant 8 : index
    %27 = vector.load %arg1[%c0_16, %c0_17, %c8] : memref<1x8x32xbf16, #tpu.memory_space<vmem>>, vector<1x8x8xbf16>
    %28 = vector.shape_cast %27 : vector<1x8x8xbf16> to vector<8x8xbf16>
    %c0_18 = arith.constant 0 : index
    %c0_19 = arith.constant 0 : index
    %c8_20 = arith.constant 8 : index
    %29 = vector.load %arg2[%c0_18, %c0_19, %c8_20] : memref<1x8x64xbf16, #tpu.memory_space<vmem>>, vector<1x8x8xbf16>
    %30 = vector.shape_cast %29 : vector<1x8x8xbf16> to vector<8x8xbf16>
    %c0_21 = arith.constant 0 : index
    %c0_22 = arith.constant 0 : index
    %c40 = arith.constant 40 : index
    %31 = vector.load %arg2[%c0_21, %c0_22, %c40] : memref<1x8x64xbf16, #tpu.memory_space<vmem>>, vector<1x8x8xbf16>
    %32 = vector.shape_cast %31 : vector<1x8x8xbf16> to vector<8x8xbf16>
    %cst_23 = arith.constant dense<0.000000e+00> : vector<8x8xf32>
    %33 = tpu.matmul %28, %30, %cst_23 {dimension_numbers = #tpu.dot_dimension_numbers<[1], [1], [0], [0], [0, 0, 1, 0], [], []>} : vector<8x8xbf16>, vector<8x8xbf16>, vector<8x8xf32> -> vector<8x8xf32>
    %cst_24 = arith.constant 0.353553385 : f32
    %34 = vector.broadcast %cst_24 : f32 to vector<8x8xf32>
    %35 = arith.mulf %33, %34 : vector<8x8xf32>
    %36 = arith.addf %35, %4 : vector<8x8xf32>
    %cst_25 = arith.constant dense<0xFF800000> : vector<8xf32>
    %37 = vector.multi_reduction <maximumf>, %36, %cst_25 [1] : vector<8x8xf32> to vector<8xf32>
    %38 = vector.shape_cast %37 : vector<8xf32> to vector<8x1xf32>
    %39 = vector.broadcast %38 : vector<8x1xf32> to vector<8x8xf32>
    %40 = arith.subf %36, %39 : vector<8x8xf32>
    %41 = math.exp %40 : vector<8x8xf32>
    %cst_26 = arith.constant dense<0.000000e+00> : vector<8xf32>
    %42 = vector.multi_reduction <add>, %41, %cst_26 [1] : vector<8x8xf32> to vector<8xf32>
    %43 = vector.shape_cast %42 : vector<8xf32> to vector<8x1xf32>
    %44 = tpu.reciprocal %43 {approx = true} : vector<8x1xf32> -> vector<8x1xf32>
    %45 = vector.broadcast %44 : vector<8x1xf32> to vector<8x8xf32>
    %46 = arith.mulf %41, %45 : vector<8x8xf32>
    %47 = arith.truncf %46 : vector<8x8xf32> to vector<8x8xbf16>
    %cst_27 = arith.constant dense<0.000000e+00> : vector<8x8xf32>
    %48 = tpu.matmul %47, %32, %cst_27 {dimension_numbers = #tpu.dot_dimension_numbers<[1], [0], [0], [1], [0, 0, 1, 1], [], []>} : vector<8x8xbf16>, vector<8x8xbf16>, vector<8x8xf32> -> vector<8x8xf32>
    %c0_28 = arith.constant 0 : index
    %c0_29 = arith.constant 0 : index
    %c16 = arith.constant 16 : index
    %49 = vector.load %arg1[%c0_28, %c0_29, %c16] : memref<1x8x32xbf16, #tpu.memory_space<vmem>>, vector<1x8x8xbf16>
    %50 = vector.shape_cast %49 : vector<1x8x8xbf16> to vector<8x8xbf16>
    %c0_30 = arith.constant 0 : index
    %c0_31 = arith.constant 0 : index
    %c16_32 = arith.constant 16 : index
    %51 = vector.load %arg2[%c0_30, %c0_31, %c16_32] : memref<1x8x64xbf16, #tpu.memory_space<vmem>>, vector<1x8x8xbf16>
    %52 = vector.shape_cast %51 : vector<1x8x8xbf16> to vector<8x8xbf16>
    %c0_33 = arith.constant 0 : index
    %c0_34 = arith.constant 0 : index
    %c48 = arith.constant 48 : index
    %53 = vector.load %arg2[%c0_33, %c0_34, %c48] : memref<1x8x64xbf16, #tpu.memory_space<vmem>>, vector<1x8x8xbf16>
    %54 = vector.shape_cast %53 : vector<1x8x8xbf16> to vector<8x8xbf16>
    %cst_35 = arith.constant dense<0.000000e+00> : vector<8x8xf32>
    %55 = tpu.matmul %50, %52, %cst_35 {dimension_numbers = #tpu.dot_dimension_numbers<[1], [1], [0], [0], [0, 0, 1, 0], [], []>} : vector<8x8xbf16>, vector<8x8xbf16>, vector<8x8xf32> -> vector<8x8xf32>
    %cst_36 = arith.constant 0.353553385 : f32
    %56 = vector.broadcast %cst_36 : f32 to vector<8x8xf32>
    %57 = arith.mulf %55, %56 : vector<8x8xf32>
    %58 = arith.addf %57, %4 : vector<8x8xf32>
    %cst_37 = arith.constant dense<0xFF800000> : vector<8xf32>
    %59 = vector.multi_reduction <maximumf>, %58, %cst_37 [1] : vector<8x8xf32> to vector<8xf32>
    %60 = vector.shape_cast %59 : vector<8xf32> to vector<8x1xf32>
    %61 = vector.broadcast %60 : vector<8x1xf32> to vector<8x8xf32>
    %62 = arith.subf %58, %61 : vector<8x8xf32>
    %63 = math.exp %62 : vector<8x8xf32>
    %cst_38 = arith.constant dense<0.000000e+00> : vector<8xf32>
    %64 = vector.multi_reduction <add>, %63, %cst_38 [1] : vector<8x8xf32> to vector<8xf32>
    %65 = vector.shape_cast %64 : vector<8xf32> to vector<8x1xf32>
    %66 = tpu.reciprocal %65 {approx = true} : vector<8x1xf32> -> vector<8x1xf32>
    %67 = vector.broadcast %66 : vector<8x1xf32> to vector<8x8xf32>
    %68 = arith.mulf %63, %67 : vector<8x8xf32>
    %69 = arith.truncf %68 : vector<8x8xf32> to vector<8x8xbf16>
    %cst_39 = arith.constant dense<0.000000e+00> : vector<8x8xf32>
    %70 = tpu.matmul %69, %54, %cst_39 {dimension_numbers = #tpu.dot_dimension_numbers<[1], [0], [0], [1], [0, 0, 1, 1], [], []>} : vector<8x8xbf16>, vector<8x8xbf16>, vector<8x8xf32> -> vector<8x8xf32>
    %c0_40 = arith.constant 0 : index
    %c0_41 = arith.constant 0 : index
    %c24 = arith.constant 24 : index
    %71 = vector.load %arg1[%c0_40, %c0_41, %c24] : memref<1x8x32xbf16, #tpu.memory_space<vmem>>, vector<1x8x8xbf16>
    %72 = vector.shape_cast %71 : vector<1x8x8xbf16> to vector<8x8xbf16>
    %c0_42 = arith.constant 0 : index
    %c0_43 = arith.constant 0 : index
    %c24_44 = arith.constant 24 : index
    %73 = vector.load %arg2[%c0_42, %c0_43, %c24_44] : memref<1x8x64xbf16, #tpu.memory_space<vmem>>, vector<1x8x8xbf16>
    %74 = vector.shape_cast %73 : vector<1x8x8xbf16> to vector<8x8xbf16>
    %c0_45 = arith.constant 0 : index
    %c0_46 = arith.constant 0 : index
    %c56 = arith.constant 56 : index
    %75 = vector.load %arg2[%c0_45, %c0_46, %c56] : memref<1x8x64xbf16, #tpu.memory_space<vmem>>, vector<1x8x8xbf16>
    %76 = vector.shape_cast %75 : vector<1x8x8xbf16> to vector<8x8xbf16>
    %cst_47 = arith.constant dense<0.000000e+00> : vector<8x8xf32>
    %77 = tpu.matmul %72, %74, %cst_47 {dimension_numbers = #tpu.dot_dimension_numbers<[1], [1], [0], [0], [0, 0, 1, 0], [], []>} : vector<8x8xbf16>, vector<8x8xbf16>, vector<8x8xf32> -> vector<8x8xf32>
    %cst_48 = arith.constant 0.353553385 : f32
    %78 = vector.broadcast %cst_48 : f32 to vector<8x8xf32>
    %79 = arith.mulf %77, %78 : vector<8x8xf32>
    %80 = arith.addf %79, %4 : vector<8x8xf32>
    %cst_49 = arith.constant dense<0xFF800000> : vector<8xf32>
    %81 = vector.multi_reduction <maximumf>, %80, %cst_49 [1] : vector<8x8xf32> to vector<8xf32>
    %82 = vector.shape_cast %81 : vector<8xf32> to vector<8x1xf32>
    %83 = vector.broadcast %82 : vector<8x1xf32> to vector<8x8xf32>
    %84 = arith.subf %80, %83 : vector<8x8xf32>
    %85 = math.exp %84 : vector<8x8xf32>
    %cst_50 = arith.constant dense<0.000000e+00> : vector<8xf32>
    %86 = vector.multi_reduction <add>, %85, %cst_50 [1] : vector<8x8xf32> to vector<8xf32>
    %87 = vector.shape_cast %86 : vector<8xf32> to vector<8x1xf32>
    %88 = tpu.reciprocal %87 {approx = true} : vector<8x1xf32> -> vector<8x1xf32>
    %89 = vector.broadcast %88 : vector<8x1xf32> to vector<8x8xf32>
    %90 = arith.mulf %85, %89 : vector<8x8xf32>
    %91 = arith.truncf %90 : vector<8x8xf32> to vector<8x8xbf16>
    %cst_51 = arith.constant dense<0.000000e+00> : vector<8x8xf32>
    %92 = tpu.matmul %91, %76, %cst_51 {dimension_numbers = #tpu.dot_dimension_numbers<[1], [0], [0], [1], [0, 0, 1, 1], [], []>} : vector<8x8xbf16>, vector<8x8xbf16>, vector<8x8xf32> -> vector<8x8xf32>
    %93 = tpu.concatenate %26, %48, %70, %92 in 1 : vector<8x8xf32>, vector<8x8xf32>, vector<8x8xf32>, vector<8x8xf32> -> vector<8x32xf32>
    %94 = arith.truncf %93 : vector<8x32xf32> to vector<8x32xbf16>
    %c0_52 = arith.constant 0 : index
    %c0_53 = arith.constant 0 : index
    %c0_54 = arith.constant 0 : index
    %95 = vector.load %arg5[%c0_52, %c0_53, %c0_54] : memref<1x8x32xbf16, #tpu.memory_space<vmem>>, vector<1x8x32xbf16>
    %96 = vector.shape_cast %95 : vector<1x8x32xbf16> to vector<8x32xbf16>
    %97 = vector.shape_cast %94 : vector<8x32xbf16> to vector<1x8x32xbf16>
    tpu.vector_store %arg5[%c0_52, %c0_53, %c0_54], %97 {strides = array<i32>} : memref<1x8x32xbf16, #tpu.memory_space<vmem>>, vector<1x8x32xbf16>,
    return
  }
  func.func @transform_0(%arg0: i32) -> (i32, i32, i32) {
    %c0_i32 = arith.constant 0 : i32
    %c0_i32_0 = arith.constant 0 : i32
    %c0_i32_1 = arith.constant 0 : i32
    return %arg0, %c0_i32, %c0_i32_0 : i32, i32, i32
  }
  func.func @transform_1(%arg0: i32) -> (i32, i32, i32) {
    %c0_i32 = arith.constant 0 : i32
    %c0_i32_0 = arith.constant 0 : i32
    %c0_i32_1 = arith.constant 0 : i32
    return %arg0, %c0_i32, %c0_i32_0 : i32, i32, i32
  }
  func.func @transform_2(%arg0: i32) -> (i32, i32) {
    %c0_i32 = arith.constant 0 : i32
    %c0_i32_0 = arith.constant 0 : i32
    %c0_i32_1 = arith.constant 0 : i32
    return %c0_i32, %c0_i32_0 : i32, i32
  }
  func.func @transform_3(%arg0: i32) -> (i32, i32, i32) {
    %c0_i32 = arith.constant 0 : i32
    %c0_i32_0 = arith.constant 0 : i32
    %c0_i32_1 = arith.constant 0 : i32
    return %arg0, %c0_i32, %c0_i32_0 : i32, i32, i32
  }
  func.func @transform_4(%arg0: i32) -> (i32, i32, i32) {
    %c0_i32 = arith.constant 0 : i32
    %c0_i32_0 = arith.constant 0 : i32
    %c0_i32_1 = arith.constant 0 : i32
    return %arg0, %c0_i32, %c0_i32_0 : i32, i32, i32
  }
}

module attributes {stable_mosaic.version = 11 : i64} {
  func.func @_linear_kernel(%arg0: i32, %arg1: i32, %arg2: memref<16x32xf32, #tpu.memory_space<vmem>>, %arg3: memref<32x48xbf16, #tpu.memory_space<vmem>>, %arg4: memref<1x48xf32, #tpu.memory_space<vmem>>, %arg5: memref<16x48xf32, #tpu.memory_space<vmem>>) attributes {dimension_semantics = [#tpu.dimension_semantics<parallel>, #tpu.dimension_semantics<parallel>], iteration_bounds = array<i64: 1, 1>, scalar_prefetch = 0 : i64, scratch_operands = 0 : i64, tpu.core_type = #tpu.core_type<tc>, window_params = [{transform_indices = @transform_0, window_bounds = array<i64: 16, 32>}, {transform_indices = @transform_1, window_bounds = array<i64: 32, 48>}, {transform_indices = @transform_2, window_bounds = array<i64: 1, 48>}, {transform_indices = @transform_3, window_bounds = array<i64: 16, 48>}]} {
    %c0 = arith.constant 0 : index
    %c0_0 = arith.constant 0 : index
    %0 = vector.load %arg2[%c0, %c0_0] : memref<16x32xf32, #tpu.memory_space<vmem>>, vector<16x32xf32>
    %1 = arith.truncf %0 : vector<16x32xf32> to vector<16x32xbf16>
    %c0_1 = arith.constant 0 : index
    %c0_2 = arith.constant 0 : index
    %2 = vector.load %arg3[%c0_1, %c0_2] : memref<32x48xbf16, #tpu.memory_space<vmem>>, vector<32x48xbf16>
    %cst = arith.constant dense<0.000000e+00> : vector<16x48xf32>
    %3 = tpu.matmul %1, %2, %cst {dimension_numbers = #tpu.dot_dimension_numbers<[1], [0], [0], [1], [0, 0, 1, 1], [], []>} : vector<16x32xbf16>, vector<32x48xbf16>, vector<16x48xf32> -> vector<16x48xf32>
    %c0_3 = arith.constant 0 : index
    %c0_4 = arith.constant 0 : index
    %4 = vector.load %arg4[%c0_3, %c0_4] : memref<1x48xf32, #tpu.memory_space<vmem>>, vector<1x48xf32>
    %5 = vector.broadcast %4 : vector<1x48xf32> to vector<16x48xf32>
    %6 = arith.addf %3, %5 : vector<16x48xf32>
    %c0_5 = arith.constant 0 : index
    %c0_6 = arith.constant 0 : index
    %7 = vector.load %arg5[%c0_5, %c0_6] : memref<16x48xf32, #tpu.memory_space<vmem>>, vector<16x48xf32>
    tpu.vector_store %arg5[%c0_5, %c0_6], %6 {strides = array<i32>} : memref<16x48xf32, #tpu.memory_space<vmem>>, vector<16x48xf32>,
    return
  }
  func.func @transform_0(%arg0: i32, %arg1: i32) -> (i32, i32) {
    %c0_i32 = arith.constant 0 : i32
    %c0_i32_0 = arith.constant 0 : i32
    return %arg0, %c0_i32 : i32, i32
  }
  func.func @transform_1(%arg0: i32, %arg1: i32) -> (i32, i32) {
    %c0_i32 = arith.constant 0 : i32
    %c0_i32_0 = arith.constant 0 : i32
    return %c0_i32, %arg1 : i32, i32
  }
  func.func @transform_2(%arg0: i32, %arg1: i32) -> (i32, i32) {
    %c0_i32 = arith.constant 0 : i32
    %c0_i32_0 = arith.constant 0 : i32
    return %c0_i32, %arg1 : i32, i32
  }
  func.func @transform_3(%arg0: i32, %arg1: i32) -> (i32, i32) {
    %c0_i32 = arith.constant 0 : i32
    return %arg0, %arg1 : i32, i32
  }
}

</mosaic_0001>

<bundles_post_ra>
// kernel: seq2seq_transformer_forward.27
= control target key start
LH: loop header
LB: loop body
LE: loop exit
PB: predicated region body
PF: predicated region fallthrough
CT: control target
= control target key end

     0   :  { %v124_v0 = vmov 0.0   ;;  %vm125_vm0 = vmmov 0   ;;  %vm41_vm1 = vcmask 261120   ;;  %vm94_vm2 = vcmask 781312   ;;  %s167_s1 = inlined_call_operand.vmem [shape: bf16[32,96], index: 1, kind: input, shape index: {}]   ;;  %s168_s0 = inlined_call_operand.vmem [shape: f32[16,32], index: 0, kind: input, shape index: {}]   ;;  %s169_s2 = inlined_call_operand.vmem [shape: f32[1,96], index: 2, kind: input, shape index: {}]   ;;  %s170_s3 = inlined_call_operand.vmem [shape: bf16[16,96], index: 3, kind: output, shape index: {}]  }
   0x1   :  { %112 = vmatprep.subr.bf16.mxu0 %v124_v0  ;;  %v122_v1 = vld [vmem:[%s167_s1] sm:$0xff]   ;;  %116 = vmatprep.mubr.msk.bf16.mxu0 %vm125_vm0, %v124_v0  ;;  %v123_v2 = vld [vmem:[%s167_s1 + $0x8] sm:$0xff]  }
   0x2   :  { %113 = vmatpush3.bf16.msra.mxu0 %v122_v1  ;;  %v15_v3 = vld [vmem:[%s168_s0] sm:$0xff]  ;;  %v16_v4 = vld [vmem:[%s168_s0 + $0x8] sm:$0xff] }
   0x3   :  { %114 = vmatprep.subr.bf16.mxu0 %v124_v0  ;;  %v17_v5 = vpack.c.bf16 %v16_v4, %v15_v3  ;;  %v101_v6 = vld [vmem:[%s169_s2] ss:$0 sm:$0xff] }
   0x6   :  { %115 = vmatpush3.bf16.msra.mxu0 %v123_v2 }
   0x9   :  { %117 = vmatmul.mubr.msk.bf16.vlgmr.msra.gmra.mrb[0].mxu0 %vm41_vm1, %v17_v5 }
  0xdc   :  { %v79_v7 = vpop.f32.mrb[0].mxu0 }
  0xdd   :  { %v80_v8 = vadd.f32 %v101_v6, %v79_v7  ;;  %v118_v9 = vpop.f32.mrb[1].mxu0 }
  0xde   :  { %v82_v10 = vpop.f32.mrb[2].mxu0 }
  0xdf   :  { %v107_v11 = vpack.c.bf16 %v80_v8, %v80_v8  ;;  %v83_v12 = vadd.f32 %v101_v6, %v82_v10  ;;  %v119_v13 = vpop.f32.mrb[3].mxu0 }
  0xe1   :  { %95 = vst.msk [vmem:[%s170_s3] sm:$0xf] %vm94_vm2, %v107_v11  ;;  %v108_v14 = vpack.c.bf16 %v83_v12, %v83_v12 }
  0xe3   :  { %96 = vst.msk [vmem:[%s170_s3 + $0x4] sm:$0xf] %vm94_vm2, %v108_v14 }

// kernel: seq2seq_transformer_forward.29
= control target key start
LH: loop header
LB: loop body
LE: loop exit
PB: predicated region body
PF: predicated region fallthrough
CT: control target
= control target key end

     0   :  { %v181_v0 = vmov 0.0   ;;  %vm182_vm0 = vmmov 0   ;;  %vm54_vm1 = vcmask 261120   ;;  %s255_s1 = inlined_call_operand.vmem [shape: bf16[32,32], index: 1, kind: input, shape index: {}]   ;;  %s256_s0 = inlined_call_operand.vmem [shape: bf16[16,32], index: 0, kind: input, shape index: {}]   ;;  %s257_s2 = inlined_call_operand.vmem [shape: f32[1,32], index: 2, kind: input, shape index: {}]   ;;  %s258_s3 = inlined_call_operand.vmem [shape: f32[16,32], index: 3, kind: input, shape index: {}]   ;;  %s259_s4 = inlined_call_operand.vmem [shape: f32[1,32], index: 4, kind: input, shape index: {}]   ;;  %s260_s5 = inlined_call_operand.vmem [shape: f32[1,32], index: 5, kind: input, shape index: {}]   ;;  %s261_s6 = inlined_call_operand.vmem [shape: f32[16,32], index: 6, kind: output, shape index: {}]  }
   0x1   :  { %164 = vmatprep.subr.bf16.mxu0 %v181_v0  ;;  %v174_v1 = vld [vmem:[%s255_s1] sm:$0xff]   ;;  %168 = vmatprep.mubr.msk.bf16.mxu0 %vm182_vm0, %v181_v0  ;;  %v175_v2 = vld [vmem:[%s255_s1 + $0x8] sm:$0xff]  }
   0x2   :  { %165 = vmatpush3.bf16.msra.mxu0 %v174_v1  ;;  %v176_v3 = vld [vmem:[%s256_s0] sm:$0xff]   ;;  %v100_v10 = vld [vmem:[%s258_s3 + $0x8] sm:$0xff] }
   0x3   :  { %166 = vmatprep.subr.bf16.mxu0 %v181_v0  ;;  %v154_v4 = vld [vmem:[%s257_s2] ss:$0 sm:$0xff] }
   0x4   :  { %v99_v6 = vld [vmem:[%s258_s3] sm:$0xff] }
   0x5   :  { %v159_v34 = vld [vmem:[%s259_s4] ss:$0 sm:$0xff] }
   0x6   :  { %167 = vmatpush3.bf16.msra.mxu0 %v175_v2  ;;  %v160_v36 = vld [vmem:[%s260_s5] ss:$0 sm:$0xff] }
   0x9   :  { %169 = vmatmul.mubr.msk.bf16.vlgmr.msra.gmra.mrb[0].mxu0 %vm54_vm1, %v176_v3 }
  0xdc   :  { %v92_v5 = vpop.f32.mrb[0].mxu0 }
  0xdd   :  { %v93_v7 = vadd.f32 %v154_v4, %v92_v5  ;;  %v170_v8 = vpop.f32.mrb[1].mxu0 }
  0xde   :  { %v95_v9 = vpop.f32.mrb[2].mxu0 }
  0xdf   :  { %v96_v11 = vadd.f32 %v154_v4, %v95_v9  ;;  %v171_v12 = vpop.f32.mrb[3].mxu0  ;;  %v101_v13 = vadd.f32 %v99_v6, %v93_v7 }
  0xe1   :  { %v105_v14 = vsel %vm54_vm1, %v101_v13, 0.0  ;;  %v102_v15 = vadd.f32 %v100_v10, %v96_v11 }
  0xe2   :  { %106 = vadd.xlane.f32.xlu0 %v105_v14 }
  0xe3   :  { %v108_v16 = vsel %vm54_vm1, %v102_v15, 0.0 }
  0xe6   :  { %109 = vadd.xlane.f32.xlu0 %v108_v16 }
 0x16f   :  { %v107_v17 = vpop.xlane.xlu0 %106 }
 0x170   :  { %v112_v18 = vmul.f32 0.03125, %v107_v17 }
 0x172   :  { %v114_v19 = vsub.f32 %v101_v13, %v112_v18 }
 0x173   :  { %v110_v20 = vpop.xlane.xlu0 %109 }
 0x174   :  { %v113_v21 = vmul.f32 0.03125, %v110_v20  ;;  %v116_v22 = vmul.f32 %v114_v19, %v114_v19 }
 0x176   :  { %v115_v23 = vsub.f32 %v102_v15, %v113_v21  ;;  %v118_v24 = vsel %vm54_vm1, %v116_v22, 0.0 }
 0x177   :  { %119 = vadd.xlane.f32.xlu1 %v118_v24 }
 0x178   :  { %v117_v25 = vmul.f32 %v115_v23, %v115_v23 }
 0x17a   :  { %v121_v26 = vsel %vm54_vm1, %v117_v25, 0.0 }
 0x17b   :  { %122 = vadd.xlane.f32.xlu1 %v121_v26 }
 0x204   :  { %v120_v27 = vpop.xlane.xlu1 %119 }
 0x205   :  { %v124_v28 = vmul.f32 0.03125, %v120_v27 }
 0x207   :  { %v126_v29 = vadd.f32 1e-05, %v124_v28 }
 0x208   :  { %v123_v30 = vpop.xlane.xlu1 %122 }
 0x209   :  { %177 = vrsqrt.f32 %v126_v29  ;;  %v125_v31 = vmul.f32 0.03125, %v123_v30 }
 0x20b   :  { %v127_v32 = vadd.f32 1e-05, %v125_v31 }
 0x20d   :  { %179 = vrsqrt.f32 %v127_v32 }
 0x213   :  { %v178_v33 = vpop.eup %177 }
 0x214   :  { %v130_v35 = vmul.f32 %v178_v33, %v114_v19 }
 0x216   :  { %v138_v37 = vmul.f32 %v159_v34, %v130_v35 }
 0x217   :  { %v180_v38 = vpop.eup %179 }
 0x218   :  { %v146_v39 = vadd.f32 %v160_v36, %v138_v37  ;;  %v131_v40 = vmul.f32 %v180_v38, %v115_v23 }
 0x21a   :  { %148 = vst.msk [vmem:[%s261_s6] sm:$0xff] %vm54_vm1, %v146_v39  ;;  %v139_v41 = vmul.f32 %v159_v34, %v131_v40 }
 0x21c   :  { %v147_v42 = vadd.f32 %v160_v36, %v139_v41 }
 0x21e   :  { %149 = vst.msk [vmem:[%s261_s6 + $0x8] sm:$0xff] %vm54_vm1, %v147_v42 }

// kernel: seq2seq_transformer_forward.28
= control target key start
LH: loop header
LB: loop body
LE: loop exit
PB: predicated region body
PF: predicated region fallthrough
CT: control target
= control target key end

     0   :  { %s892_s12 = smov 0   ;;  %s994_s0 = inlined_call_operand.vmem [shape: bf16[2,8,96], index: 0, kind: input, shape index: {}]   ;;  %s995_s1 = inlined_call_operand.vmem [shape: f32[8,8], index: 1, kind: input, shape index: {}]   ;;  %s996_s2 = inlined_call_operand.vmem [shape: f32[2,1,8], index: 2, kind: input, shape index: {}]   ;;  %s997_s3 = inlined_call_operand.vmem [shape: bf16[2,8,32], index: 3, kind: output, shape index: {}]  }
   0x1 LB: > { %s724_s13 = sadd.s32 4294967295, %s854_s12   ;;  %p728_p0 = scmp.ge.s32.totalorder %s854_s12, 1  ;;  %s854_s12 = sphi %s892_s12, %s13_s12  }
   0x2   : > { %p144_p1 = scmp.lt.s32.totalorder %s854_s12, 3 }
   0x4   : > { %p145_p2 = pnand %p728_p0, %p144_p1 }
   0x5   : > { %p169_p3 = scmp.lt.s32.totalorder (!%p145_p2), %s724_s13, 1  ;;  %v856_v0 = vmov (!%p145_p2), 0.0   ;;  %vm857_vm0 = vmmov (!%p145_p2), 0   ;;  %s858_s18 = smov (!%p145_p2), 96   ;;  %vm196_vm1 = vcmask (!%p145_p2), 64512   ;;  %v181_v5 = vld [vmem:[%s995_s1] sm:$0xff] (!%p145_p2) }
   0x6   : > { %148 = sbr.rel (%p145_p2) target bundleno = 1606 (0x646), region = 32  ;;  %759 = vmatprep.subr.bf16.mxu0 (!%p145_p2), %v856_v0  ;;  %761 = vmatprep.mubr.msk.bf16.mxu0 (!%p145_p2), %vm857_vm0, %v856_v0  ;;  %s859_s19 = smov (!%p145_p2), 64   ;;  %vm262_vm2 = vcmask (!%p145_p2), 1043456   ;;  %vm655_vm3 = vcmask (!%p145_p2), 130048   ;;  %vm657_vm4 = vcmask (!%p145_p2), 195584   ;;  %vm660_vm5 = vcmask (!%p145_p2), 257024  }
   0x7   : > { %765 = vmatprep.subr.bf16.mxu1 (!%p145_p2), %v856_v0  ;;  %767 = vmatprep.mubr.msk.bf16.mxu1 (!%p145_p2), %vm857_vm0, %v856_v0  ;;  %s860_s20 = smov (!%p145_p2), 88   ;;  %s861_s26 = smov (!%p145_p2), 72  }
   0x8   : > { %s862_s27 = smov (!%p145_p2), 120   ;;  %s863_s28 = smov (!%p145_p2), 80  }
   0x9   : > { %s864_s29 = smov (!%p145_p2), 112   ;;  %s865_s30 = smov (!%p145_p2), 104  }
   0xa   : > { %s866_s4 = smov (!%p145_p2), 56   ;;  %s867_s5 = smov (!%p145_p2), 48  }
   0xb   : > { %s868_s6 = smov (!%p145_p2), 40   ;;  %s869_s7 = smov (!%p145_p2), 8  }
   0xc   : > { %s870_s8 = smov (!%p145_p2), 16   ;;  %s871_s9 = smov (!%p145_p2), 24  }
   0xd   : > { %s999_s13 = smov (!%p169_p3, %s724_s13), 1 }
   0xe   : > { %s729_s14 = sshll.u32 %s999_s13, 2  ;;  %s175_s23 = scalar_lea.vmem %s996_s2, %s999_s13 }
   0xf   : > { %s172_s17 = scalar_lea.vmem %s994_s0, %s729_s14  ;;  %v731_v6 = vld [vmem:[%s175_s23] ss:$0 sm:$0xff]  ;;  %s179_s15 = scalar_lea.vmem %s997_s3, %s729_s14 }
  0x10   : > { %v190_v1 = vld [vmem:[%s172_s17] sm:$0xf]  ;;  %v931_v7 = vadd.f32 %v731_v6, %v181_v5 }
  0x11   : > { %v914_v2 = vcombine.low %v190_v1, %v190_v1 }
  0x13   : > { %194 = vrot.lane.b32.xlu0 %v914_v2, %s858_s18  ;;  %257 = vrot.lane.b32.xlu1 %v914_v2, %s859_s19 }
  0x17   : > { %308 = vrot.lane.b32.xlu1 %v914_v2, %s860_s20 }
  0x85   : > { %v195_v3 = vpop.permute.xlu0 %194  ;;  %v258_v15 = vpop.permute.xlu1 %257 }
  0x86   : > { %v201_v4 = vsel %vm196_vm1, %v195_v3, 0  ;;  %v264_v16 = vsel %vm262_vm2, %v258_v15, 0 }
  0x87   : > { %760 = vmatpush3.bf16.xpose.msra.mxu0 %v201_v4  ;;  %766 = vmatpush3.bf16.msra.mxu1 %v264_v16 }
  0x88   : > { %777 = vmatprep.subr.bf16.mxu0 %v856_v0  ;;  %771 = vmatprep.subr.bf16.mxu1 %v856_v0 }
  0x89   : > { %v309_v22 = vpop.permute.xlu1 %308 }
  0x8a   : > { %v314_v28 = vsel %vm196_vm1, %v309_v22, 0 }
  0x8e   : > { %762 = vmatmul.mubr.msk.bf16.vlgmr.msra.gmra.mrb[0].mxu0 %vm196_vm1, %v190_v1 }
  0x8f   : > { %779 = vmatprep.mubr.msk.bf16.mxu0 %vm857_vm0, %v856_v0 }
 0x161   : > { %v237_v8 = vpop.f32.mrb[0].mxu0 }
 0x162   : > { %v243_v9 = vmul.f32 0.35355338, %v237_v8  ;;  %v763_v10 = vpop.f32.mrb[1].mxu0 }
 0x163   : > { %v240_v11 = vpop.f32.mrb[2].mxu0 }
 0x164   : > { %v764_v12 = vpop.f32.mrb[3].mxu0  ;;  %v244_v13 = vadd.f32 %v243_v9, %v931_v7 }
 0x166   : > { %v245_v14 = vsel %vm196_vm1, %v244_v13, -inf }
 0x167   : > { %246 = vmax.xlane.f32.xlu0 %v245_v14 }
 0x17d   : > { %532 = vrot.lane.b32.xlu0 %v914_v2, %s861_s26 }
 0x1f4   : > { %v247_v17 = vpop.xlane.xlu0 %246 }
 0x1f5   : > { %v248_v18 = vsub.f32 %v244_v13, %v247_v17 }
 0x1f7   : > { %v249_v19 = vmul.f32 1.442695, %v248_v18 }
 0x1f8   : > { %v533_v31 = vpop.permute.xlu0 %532 }
 0x1f9   : > { %832 = vpow2.f32 %v249_v19  ;;  %v538_v33 = vsel %vm196_vm1, %v533_v31, 0 }
 0x203   : > { %v833_v20 = vpop.eup %832 }
 0x204   : > { %v251_v21 = vsel %vm196_vm1, %v833_v20, 0.0 }
 0x205   : > { %252 = vadd.xlane.f32.xlu1 %v251_v21 }
 0x216   : > { %306 = vrot.lane.b32.xlu1 %v914_v2, %s862_s27 }
 0x21a   : > { %420 = vrot.lane.b32.xlu1 %v914_v2, %s863_s28 }
 0x21e   : > { %418 = vrot.lane.b32.xlu1 %v914_v2, %s864_s29 }
 0x222   : > { %530 = vrot.lane.b32.xlu1 %v914_v2, %s865_s30 }
 0x292   : > { %v253_v23 = vpop.xlane.xlu1 %252 }
 0x293   : > { %834 = vrcp.f32 %v253_v23 }
 0x296   : > { %v307_v26 = vpop.permute.xlu1 %306 }
 0x29a   : > { %v421_v29 = vpop.permute.xlu1 %420 }
 0x29b   : > { %v426_v30 = vsel %vm196_vm1, %v421_v29, 0 }
 0x29d   : > { %v835_v24 = vpop.eup %834 }
 0x29e   : > { %v255_v25 = vmul.f32 %v835_v24, %v833_v20  ;;  %v419_v32 = vpop.permute.xlu1 %418 }
 0x2a0   : > { %v256_v27 = vpack.c.bf16 %v255_v25, %v255_v25 }
 0x2a2   : > { %768 = vmatmul.mubr.msk.bf16.vlgmr.msra.gmra.mrb[0].mxu1 %vm196_vm1, %v256_v27  ;;  %v531_v34 = vpop.permute.xlu1 %530 }
 0x2a3   : > { %772 = vmatpush3.bf16.xpose.msra.mxu1 %v314_v28  ;;  %773 = vmatprep.mubr.msk.bf16.mxu1 %vm857_vm0, %v856_v0 }
 0x2a4   : > { %783 = vmatprep.subr.bf16.mxu1 %v856_v0 }
 0x2aa   : > { %774 = vmatmul.mubr.msk.bf16.vlgmr.msra.gmra.mrb[4].mxu1 %vm196_vm1, %v307_v26 }
 0x2ab   : > { %784 = vmatpush3.bf16.xpose.msra.mxu1 %v426_v30  ;;  %785 = vmatprep.mubr.msk.bf16.mxu1 %vm857_vm0, %v856_v0 }
 0x2ac   : > { %795 = vmatprep.subr.bf16.mxu1 %v856_v0 }
 0x2b2   : > { %786 = vmatmul.mubr.msk.bf16.vlgmr.msra.gmra.mrb[8].mxu1 %vm196_vm1, %v419_v32 }
 0x2b3   : > { %796 = vmatpush3.bf16.xpose.msra.mxu1 %v538_v33  ;;  %797 = vmatprep.mubr.msk.bf16.mxu1 %vm857_vm0, %v856_v0 }
 0x2ba   : > { %798 = vmatmul.mubr.msk.bf16.vlgmr.msra.gmra.mrb[12].mxu1 %vm196_vm1, %v531_v34 }
 0x375   : > { %v958_v35 = vpop.f32.mrb[0].mxu1 }
 0x376   : > { %v769_v36 = vpop.f32.mrb[1].mxu1 }
 0x377   : > { %v303_v37 = vpop.f32.mrb[2].mxu1 }
 0x378   : > { %v770_v38 = vpop.f32.mrb[3].mxu1 }
 0x37d   : > { %v350_v39 = vpop.f32.mrb[4].mxu1 }
 0x37e   : > { %v356_v40 = vmul.f32 0.35355338, %v350_v39  ;;  %v775_v41 = vpop.f32.mrb[5].mxu1 }
 0x37f   : > { %v353_v42 = vpop.f32.mrb[6].mxu1 }
 0x380   : > { %v776_v43 = vpop.f32.mrb[7].mxu1  ;;  %v357_v44 = vadd.f32 %v356_v40, %v931_v7 }
 0x382   : > { %v358_v45 = vsel %vm196_vm1, %v357_v44, -inf }
 0x383   : > { %359 = vmax.xlane.f32.xlu1 %v358_v45 }
 0x385   : > { %v462_v46 = vpop.f32.mrb[8].mxu1 }
 0x386   : > { %v468_v47 = vmul.f32 0.35355338, %v462_v46  ;;  %v787_v48 = vpop.f32.mrb[9].mxu1 }
 0x387   : > { %v465_v49 = vpop.f32.mrb[10].mxu1 }
 0x388   : > { %v469_v50 = vadd.f32 %v468_v47, %v931_v7  ;;  %v788_v51 = vpop.f32.mrb[11].mxu1 }
 0x38a   : > { %v470_v52 = vsel %vm196_vm1, %v469_v50, -inf }
 0x38b   : > { %471 = vmax.xlane.f32.xlu0 %v470_v52 }
 0x38d   : > { %v574_v53 = vpop.f32.mrb[12].mxu1 }
 0x38e   : > { %v580_v54 = vmul.f32 0.35355338, %v574_v53  ;;  %v799_v55 = vpop.f32.mrb[13].mxu1 }
 0x38f   : > { %v577_v56 = vpop.f32.mrb[14].mxu1 }
 0x390   : > { %v581_v57 = vadd.f32 %v580_v54, %v931_v7  ;;  %v800_v58 = vpop.f32.mrb[15].mxu1 }
 0x392   : > { %v582_v59 = vsel %vm196_vm1, %v581_v57, -inf }
 0x393   : > { %583 = vmax.xlane.f32.xlu1 %v582_v59 }
 0x410   : > { %v360_v60 = vpop.xlane.xlu1 %359 }
 0x411   : > { %v361_v61 = vsub.f32 %v357_v44, %v360_v60 }
 0x413   : > { %v362_v62 = vmul.f32 1.442695, %v361_v61 }
 0x415   : > { %836 = vpow2.f32 %v362_v62 }
 0x418   : > { %v472_v7 = vpop.xlane.xlu0 %471 }
 0x419   : > { %v473_v9 = vsub.f32 %v469_v50, %v472_v7 }
 0x41b   : > { %v474_v10 = vmul.f32 1.442695, %v473_v9 }
 0x41f   : > { %v837_v63 = vpop.eup %836 }
 0x420   : > { %v584_v1 = vpop.xlane.xlu1 %583  ;;  %v364_v3 = vsel %vm196_vm1, %v837_v63, 0.0 }
 0x421   : > { %v585_v4 = vsub.f32 %v581_v57, %v584_v1  ;;  %365 = vadd.xlane.f32.xlu1 %v364_v3 }
 0x423   : > { %v586_v5 = vmul.f32 1.442695, %v585_v4 }
 0x425   : > { %838 = vpow2.f32 %v586_v5 }
 0x426   : > { %840 = vpow2.f32 %v474_v10 }
 0x42f   : > { %v839_v6 = vpop.eup %838 }
 0x430   : > { %v588_v8 = vsel %vm196_vm1, %v839_v6, 0.0  ;;  %v841_v11 = vpop.eup %840 }
 0x431   : > { %589 = vadd.xlane.f32.xlu0 %v588_v8  ;;  %v476_v12 = vsel %vm196_vm1, %v841_v11, 0.0 }
 0x432   : > { %370 = vrot.lane.b32.xlu1 %v914_v2, %s866_s4 }
 0x447   : > { %482 = vrot.lane.b32.xlu0 %v914_v2, %s867_s5 }
 0x456   : > { %477 = vadd.xlane.f32.xlu1 %v476_v12 }
 0x467   : > { %594 = vrot.lane.b32.xlu1 %v914_v2, %s868_s6 }
 0x4ae   : > { %v366_v13 = vpop.xlane.xlu1 %365 }
 0x4af   : > { %842 = vrcp.f32 %v366_v13 }
 0x4b2   : > { %v371_v14 = vpop.permute.xlu1 %370 }
 0x4b3   : > { %v376_v15 = vsel %vm262_vm2, %v371_v14, 0 }
 0x4b4   : > { %778 = vmatpush3.bf16.msra.mxu0 %v376_v15 }
 0x4b5   : > { %789 = vmatprep.subr.bf16.mxu0 %v856_v0 }
 0x4b9   : > { %v843_v16 = vpop.eup %842 }
 0x4ba   : > { %v368_v17 = vmul.f32 %v843_v16, %v837_v63 }
 0x4bc   : > { %v369_v18 = vpack.c.bf16 %v368_v17, %v368_v17 }
 0x4be   : > { %780 = vmatmul.mubr.msk.bf16.vlgmr.msra.gmra.mrb[4].mxu0 %vm196_vm1, %v369_v18  ;;  %v590_v19 = vpop.xlane.xlu0 %589 }
 0x4bf   : > { %791 = vmatprep.mubr.msk.bf16.mxu0 %vm857_vm0, %v856_v0 }
 0x4c2   : > { %v483_v20 = vpop.permute.xlu0 %482 }
 0x4c3   : > { %v488_v2 = vsel %vm262_vm2, %v483_v20, 0 }
 0x4c4   : > { %790 = vmatpush3.bf16.msra.mxu0 %v488_v2 }
 0x4c5   : > { %801 = vmatprep.subr.bf16.mxu0 %v856_v0 }
 0x4e3   : > { %v478_v21 = vpop.xlane.xlu1 %477 }
 0x4e4   : > { %844 = vrcp.f32 %v478_v21 }
 0x4e5   : > { %846 = vrcp.f32 %v590_v19 }
 0x4e7   : > { %v595_v23 = vpop.permute.xlu1 %594 }
 0x4e8   : > { %v600_v25 = vsel %vm262_vm2, %v595_v23, 0 }
 0x4ee   : > { %v845_v22 = vpop.eup %844 }
 0x4ef   : > { %v480_v24 = vmul.f32 %v845_v22, %v841_v11  ;;  %v847_v27 = vpop.eup %846 }
 0x4f0   : > { %v592_v28 = vmul.f32 %v847_v27, %v839_v6 }
 0x4f1   : > { %v481_v26 = vpack.c.bf16 %v480_v24, %v480_v24 }
 0x4f2   : > { %v593_v29 = vpack.c.bf16 %v592_v28, %v592_v28 }
 0x4f3   : > { %792 = vmatmul.mubr.msk.bf16.vlgmr.msra.gmra.mrb[8].mxu0 %vm196_vm1, %v481_v26 }
 0x4f4   : > { %802 = vmatpush3.bf16.msra.mxu0 %v600_v25  ;;  %803 = vmatprep.mubr.msk.bf16.mxu0 %vm857_vm0, %v856_v0 }
 0x4fb   : > { %804 = vmatmul.mubr.msk.bf16.vlgmr.msra.gmra.mrb[12].mxu0 %vm196_vm1, %v593_v29 }
 0x591   : > { %v412_v30 = vpop.f32.mrb[4].mxu0 }
 0x592   : > { %643 = vrot.lane.b32.xlu1 %v412_v30, %s869_s7  ;;  %v781_v31 = vpop.f32.mrb[5].mxu0 }
 0x593   : > { %v415_v32 = vpop.f32.mrb[6].mxu0 }
 0x594   : > { %v782_v33 = vpop.f32.mrb[7].mxu0 }
 0x5c6   : > { %v524_v34 = vpop.f32.mrb[8].mxu0 }
 0x5c7   : > { %647 = vrot.lane.b32.xlu0 %v524_v34, %s870_s8  ;;  %v793_v36 = vpop.f32.mrb[9].mxu0 }
 0x5c8   : > { %v527_v37 = vpop.f32.mrb[10].mxu0 }
 0x5c9   : > { %v794_v38 = vpop.f32.mrb[11].mxu0 }
 0x5ce   : > { %v636_v39 = vpop.f32.mrb[12].mxu0 }
 0x5cf   : > { %651 = vrot.lane.b32.xlu1 %v636_v39, %s871_s9  ;;  %v805_v0 = vpop.f32.mrb[13].mxu0 }
 0x5d0   : > { %v639_v40 = vpop.f32.mrb[14].mxu0 }
 0x5d1   : > { %v806_v41 = vpop.f32.mrb[15].mxu0 }
 0x604   : > { %v644_v42 = vpop.permute.xlu1 %643 }
 0x605   : > { %v654_v44 = vsel %vm196_vm1, %v958_v35, %v644_v42 }
 0x639   : > { %v648_v43 = vpop.permute.xlu0 %647 }
 0x63a   : > { %v656_v45 = vsel %vm655_vm3, %v654_v44, %v648_v43 }
 0x641   : > { %v652_v46 = vpop.permute.xlu1 %651 }
 0x642   : > { %v658_v47 = vsel %vm657_vm4, %v656_v45, %v652_v46 }
 0x643   : > { %v659_v48 = vpack.c.bf16 %v658_v47, %v658_v47 }
 0x645   : > { %661 = vst.msk [vmem:[%s179_s15] sm:$0xf] %vm660_vm5, %v659_v48 }
 0x646 PF: > { %s13_s12 = sadd.s32 1, %s854_s12  }
 0x647   : > { %p10_p4 = scmp.ge.s32.totalorder %s13_s12, 4  }
 0x649   :  { %12 = sbr.rel (!%p10_p4) target bundleno = 1 (0x1), region = 65 }

// kernel: seq2seq_transformer_forward.30
= control target key start
LH: loop header
LB: loop body
LE: loop exit
PB: predicated region body
PF: predicated region fallthrough
CT: control target
= control target key end

     0   :  { %v292_v0 = vmov 0.0   ;;  %vm293_vm0 = vmmov 0   ;;  %vm53_vm1 = vcmask 261120   ;;  %vm133_vm2 = vcmask 523264   ;;  %s383_s1 = inlined_call_operand.vmem [shape: bf16[32,64], index: 1, kind: input, shape index: {}]   ;;  %s384_s0 = inlined_call_operand.vmem [shape: f32[16,32], index: 0, kind: input, shape index: {}]   ;;  %s385_s3 = inlined_call_operand.vmem [shape: bf16[64,32], index: 3, kind: input, shape index: {}]   ;;  %s386_s2 = inlined_call_operand.vmem [shape: f32[1,64], index: 2, kind: input, shape index: {}]   ;;  %s387_s4 = inlined_call_operand.vmem [shape: f32[1,32], index: 4, kind: input, shape index: {}]   ;;  %s388_s5 = inlined_call_operand.vmem [shape: f32[1,32], index: 5, kind: input, shape index: {}]   ;;  %s389_s6 = inlined_call_operand.vmem [shape: f32[1,32], index: 6, kind: input, shape index: {}]   ;;  %s390_s7 = inlined_call_operand.vmem [shape: f32[16,32], index: 7, kind: output, shape index: {}]  }
   0x1   :  { %260 = vmatprep.subr.bf16.mxu0 %v292_v0  ;;  %v282_v1 = vld [vmem:[%s383_s1] sm:$0xff]   ;;  %264 = vmatprep.mubr.msk.bf16.mxu0 %vm293_vm0, %v292_v0  ;;  %v283_v2 = vld [vmem:[%s383_s1 + $0x8] sm:$0xff]   ;;  %v286_v8 = vld [vmem:[%s385_s3 + $0x10] sm:$0xff]  }
   0x2   :  { %268 = vmatprep.subr.bf16.mxu1 %v292_v0  ;;  %276 = vmatprep.mubr.msk.bf16.mxu1 %vm293_vm0, %v292_v0  ;;  %v27_v3 = vld [vmem:[%s384_s0] sm:$0xff]  ;;  %v28_v4 = vld [vmem:[%s384_s0 + $0x8] sm:$0xff]  ;;  %v287_v9 = vld [vmem:[%s385_s3 + $0x18] sm:$0xff]  }
   0x3   :  { %261 = vmatpush3.bf16.msra.mxu0 %v282_v1  ;;  %v284_v5 = vld [vmem:[%s385_s3] sm:$0xff]   ;;  %v285_v6 = vld [vmem:[%s385_s3 + $0x8] sm:$0xff]   ;;  %v29_v7 = vpack.c.bf16 %v28_v4, %v27_v3 }
   0x4   :  { %262 = vmatprep.subr.bf16.mxu0 %v292_v0  ;;  %269 = vmatpush3.bf16.msra.mxu1 %v284_v5  ;;  %v240_v10 = vld [vmem:[%s386_s2] ss:$0 sm:$0xff] }
   0x5   :  { %270 = vmatprep.subr.bf16.mxu1 %v292_v0  ;;  %v249_v21 = vld [vmem:[%s387_s4] ss:$0 sm:$0xff] }
   0x6   :  { %v250_v48 = vld [vmem:[%s388_s5] ss:$0 sm:$0xff] }
   0x7   :  { %263 = vmatpush3.bf16.msra.mxu0 %v283_v2  ;;  %v251_v50 = vld [vmem:[%s389_s6] ss:$0 sm:$0xff] }
   0x8   :  { %271 = vmatpush3.bf16.msra.mxu1 %v285_v6 }
   0x9   :  { %272 = vmatprep.subr.bf16.mxu1 %v292_v0 }
   0xa   :  { %265 = vmatmul.mubr.msk.bf16.vlgmr.msra.gmra.mrb[0].mxu0 %vm53_vm1, %v29_v7 }
   0xc   :  { %273 = vmatpush3.bf16.msra.mxu1 %v286_v8 }
   0xd   :  { %274 = vmatprep.subr.bf16.mxu1 %v292_v0 }
  0x10   :  { %275 = vmatpush3.bf16.msra.mxu1 %v287_v9 }
  0xdd   :  { %v91_v11 = vpop.f32.mrb[0].mxu0 }
  0xde   :  { %v92_v12 = vadd.f32 %v240_v10, %v91_v11  ;;  %v266_v13 = vpop.f32.mrb[1].mxu0 }
  0xdf   :  { %v94_v14 = vpop.f32.mrb[2].mxu0 }
  0xe0   :  { %v95_v15 = vadd.f32 %v240_v10, %v94_v14  ;;  %v267_v16 = vpop.f32.mrb[3].mxu0  ;;  %v98_v17 = vmax.f32 %v92_v12, 0.0 }
  0xe2   :  { %v99_v18 = vmax.f32 %v95_v15, 0.0 }
  0xe4   :  { %v100_v19 = vpack.c.bf16 %v99_v18, %v98_v17 }
  0xe6   :  { %277 = vmatmul.mubr.msk.bf16.vlgmr.msra.gmra.mrb[0].mxu1 %vm133_vm2, %v100_v19 }
 0x1b9   :  { %v171_v20 = vpop.f32.mrb[0].mxu1 }
 0x1ba   :  { %v178_v22 = vadd.f32 %v171_v20, %v27_v3  ;;  %v278_v23 = vpop.f32.mrb[1].mxu1 }
 0x1bb   :  { %v174_v24 = vpop.f32.mrb[2].mxu1 }
 0x1bc   :  { %v179_v25 = vadd.f32 %v174_v24, %v28_v4  ;;  %v279_v26 = vpop.f32.mrb[3].mxu1  ;;  %v187_v27 = vadd.f32 %v249_v21, %v178_v22 }
 0x1be   :  { %v191_v28 = vsel %vm53_vm1, %v187_v27, 0.0  ;;  %v188_v29 = vadd.f32 %v249_v21, %v179_v25 }
 0x1bf   :  { %192 = vadd.xlane.f32.xlu0 %v191_v28 }
 0x1c0   :  { %v194_v30 = vsel %vm53_vm1, %v188_v29, 0.0 }
 0x1c3   :  { %195 = vadd.xlane.f32.xlu0 %v194_v30 }
 0x24c   :  { %v193_v31 = vpop.xlane.xlu0 %192 }
 0x24d   :  { %v198_v32 = vmul.f32 0.03125, %v193_v31 }
 0x24f   :  { %v200_v33 = vsub.f32 %v187_v27, %v198_v32 }
 0x250   :  { %v196_v34 = vpop.xlane.xlu0 %195 }
 0x251   :  { %v199_v35 = vmul.f32 0.03125, %v196_v34  ;;  %v202_v36 = vmul.f32 %v200_v33, %v200_v33 }
 0x253   :  { %v201_v37 = vsub.f32 %v188_v29, %v199_v35  ;;  %v204_v38 = vsel %vm53_vm1, %v202_v36, 0.0 }
 0x254   :  { %205 = vadd.xlane.f32.xlu1 %v204_v38 }
 0x255   :  { %v203_v39 = vmul.f32 %v201_v37, %v201_v37 }
 0x257   :  { %v207_v40 = vsel %vm53_vm1, %v203_v39, 0.0 }
 0x258   :  { %208 = vadd.xlane.f32.xlu1 %v207_v40 }
 0x2e1   :  { %v206_v41 = vpop.xlane.xlu1 %205 }
 0x2e2   :  { %v210_v42 = vmul.f32 0.03125, %v206_v41 }
 0x2e4   :  { %v212_v43 = vadd.f32 1e-05, %v210_v42 }
 0x2e5   :  { %v209_v44 = vpop.xlane.xlu1 %208 }
 0x2e6   :  { %288 = vrsqrt.f32 %v212_v43  ;;  %v211_v45 = vmul.f32 0.03125, %v209_v44 }
 0x2e8   :  { %v213_v46 = vadd.f32 1e-05, %v211_v45 }
 0x2ea   :  { %290 = vrsqrt.f32 %v213_v46 }
 0x2f0   :  { %v289_v47 = vpop.eup %288 }
 0x2f1   :  { %v216_v49 = vmul.f32 %v289_v47, %v200_v33 }
 0x2f3   :  { %v224_v51 = vmul.f32 %v250_v48, %v216_v49 }
 0x2f4   :  { %v291_v52 = vpop.eup %290 }
 0x2f5   :  { %v232_v53 = vadd.f32 %v251_v50, %v224_v51  ;;  %v217_v54 = vmul.f32 %v291_v52, %v201_v37 }
 0x2f7   :  { %234 = vst.msk [vmem:[%s390_s7] sm:$0xff] %vm53_vm1, %v232_v53  ;;  %v225_v55 = vmul.f32 %v250_v48, %v217_v54 }
 0x2f9   :  { %v233_v56 = vadd.f32 %v251_v50, %v225_v55 }
 0x2fb   :  { %235 = vst.msk [vmem:[%s390_s7 + $0x8] sm:$0xff] %vm53_vm1, %v233_v56 }

// kernel: seq2seq_transformer_forward.35
= control target key start
LH: loop header
LB: loop body
LE: loop exit
PB: predicated region body
PF: predicated region fallthrough
CT: control target
= control target key end

     0   :  { %vm18_vm0 = vcmask 261120   ;;  %s118_s0 = inlined_call_operand.vmem [shape: f32[16,32], index: 0, kind: input, shape index: {}]   ;;  %s119_s1 = inlined_call_operand.vmem [shape: f32[1,32], index: 1, kind: input, shape index: {}]   ;;  %s120_s2 = inlined_call_operand.vmem [shape: f32[1,32], index: 2, kind: input, shape index: {}]   ;;  %s121_s3 = inlined_call_operand.vmem [shape: f32[16,32], index: 3, kind: output, shape index: {}]  }
   0x1   :  { %v14_v0 = vld [vmem:[%s118_s0] sm:$0xff]  ;;  %v15_v1 = vld [vmem:[%s118_s0 + $0x8] sm:$0xff] }
   0x2   :  { %v19_v2 = vsel %vm18_vm0, %v14_v0, 0.0  ;;  %v22_v3 = vsel %vm18_vm0, %v15_v1, 0.0  ;;  %v68_v21 = vld [vmem:[%s119_s1] ss:$0 sm:$0xff] }
   0x3   :  { %20 = vadd.xlane.f32.xlu0 %v19_v2  ;;  %v69_v23 = vld [vmem:[%s120_s2] ss:$0 sm:$0xff] }
   0x7   :  { %23 = vadd.xlane.f32.xlu0 %v22_v3 }
  0x90   :  { %v21_v4 = vpop.xlane.xlu0 %20 }
  0x91   :  { %v26_v5 = vmul.f32 0.03125, %v21_v4 }
  0x93   :  { %v28_v6 = vsub.f32 %v14_v0, %v26_v5 }
  0x94   :  { %v24_v7 = vpop.xlane.xlu0 %23 }
  0x95   :  { %v27_v8 = vmul.f32 0.03125, %v24_v7  ;;  %v30_v9 = vmul.f32 %v28_v6, %v28_v6 }
  0x97   :  { %v29_v10 = vsub.f32 %v15_v1, %v27_v8  ;;  %v32_v11 = vsel %vm18_vm0, %v30_v9, 0.0 }
  0x98   :  { %33 = vadd.xlane.f32.xlu1 %v32_v11 }
  0x99   :  { %v31_v12 = vmul.f32 %v29_v10, %v29_v10 }
  0x9b   :  { %v35_v13 = vsel %vm18_vm0, %v31_v12, 0.0 }
  0x9c   :  { %36 = vadd.xlane.f32.xlu1 %v35_v13 }
 0x125   :  { %v34_v14 = vpop.xlane.xlu1 %33 }
 0x126   :  { %v38_v15 = vmul.f32 0.03125, %v34_v14 }
 0x128   :  { %v40_v16 = vadd.f32 1e-05, %v38_v15 }
 0x129   :  { %v37_v17 = vpop.xlane.xlu1 %36 }
 0x12a   :  { %70 = vrsqrt.f32 %v40_v16  ;;  %v39_v18 = vmul.f32 0.03125, %v37_v17 }
 0x12c   :  { %v41_v19 = vadd.f32 1e-05, %v39_v18 }
 0x12e   :  { %72 = vrsqrt.f32 %v41_v19 }
 0x134   :  { %v71_v20 = vpop.eup %70 }
 0x135   :  { %v44_v22 = vmul.f32 %v71_v20, %v28_v6 }
 0x137   :  { %v52_v24 = vmul.f32 %v68_v21, %v44_v22 }
 0x138   :  { %v73_v25 = vpop.eup %72 }
 0x139   :  { %v60_v26 = vadd.f32 %v69_v23, %v52_v24  ;;  %v45_v27 = vmul.f32 %v73_v25, %v29_v10 }
 0x13b   :  { %62 = vst.msk [vmem:[%s121_s3] sm:$0xff] %vm18_vm0, %v60_v26  ;;  %v53_v28 = vmul.f32 %v68_v21, %v45_v27 }
 0x13d   :  { %v61_v29 = vadd.f32 %v69_v23, %v53_v28 }
 0x13f   :  { %63 = vst.msk [vmem:[%s121_s3 + $0x8] sm:$0xff] %vm18_vm0, %v61_v29 }

// kernel: seq2seq_transformer_forward.40
= control target key start
LH: loop header
LB: loop body
LE: loop exit
PB: predicated region body
PF: predicated region fallthrough
CT: control target
= control target key end

     0   :  { %v124_v0 = vmov 0.0   ;;  %vm125_vm0 = vmmov 0   ;;  %vm41_vm1 = vcmask 261120   ;;  %vm94_vm2 = vcmask 519168   ;;  %s167_s1 = inlined_call_operand.vmem [shape: bf16[32,64], index: 1, kind: input, shape index: {}]   ;;  %s168_s0 = inlined_call_operand.vmem [shape: f32[16,32], index: 0, kind: input, shape index: {}]   ;;  %s169_s2 = inlined_call_operand.vmem [shape: f32[1,64], index: 2, kind: input, shape index: {}]   ;;  %s170_s3 = inlined_call_operand.vmem [shape: bf16[16,64], index: 3, kind: output, shape index: {}]  }
   0x1   :  { %112 = vmatprep.subr.bf16.mxu0 %v124_v0  ;;  %v122_v1 = vld [vmem:[%s167_s1] sm:$0xff]   ;;  %116 = vmatprep.mubr.msk.bf16.mxu0 %vm125_vm0, %v124_v0  ;;  %v123_v2 = vld [vmem:[%s167_s1 + $0x8] sm:$0xff]  }
   0x2   :  { %113 = vmatpush3.bf16.msra.mxu0 %v122_v1  ;;  %v15_v3 = vld [vmem:[%s168_s0] sm:$0xff]  ;;  %v16_v4 = vld [vmem:[%s168_s0 + $0x8] sm:$0xff] }
   0x3   :  { %114 = vmatprep.subr.bf16.mxu0 %v124_v0  ;;  %v17_v5 = vpack.c.bf16 %v16_v4, %v15_v3  ;;  %v101_v6 = vld [vmem:[%s169_s2] ss:$0 sm:$0xff] }
   0x6   :  { %115 = vmatpush3.bf16.msra.mxu0 %v123_v2 }
   0x9   :  { %117 = vmatmul.mubr.msk.bf16.vlgmr.msra.gmra.mrb[0].mxu0 %vm41_vm1, %v17_v5 }
  0xdc   :  { %v79_v7 = vpop.f32.mrb[0].mxu0 }
  0xdd   :  { %v80_v8 = vadd.f32 %v101_v6, %v79_v7  ;;  %v118_v9 = vpop.f32.mrb[1].mxu0 }
  0xde   :  { %v82_v10 = vpop.f32.mrb[2].mxu0 }
  0xdf   :  { %v107_v11 = vpack.c.bf16 %v80_v8, %v80_v8  ;;  %v83_v12 = vadd.f32 %v101_v6, %v82_v10  ;;  %v119_v13 = vpop.f32.mrb[3].mxu0 }
  0xe1   :  { %95 = vst.msk [vmem:[%s170_s3] sm:$0xf] %vm94_vm2, %v107_v11  ;;  %v108_v14 = vpack.c.bf16 %v83_v12, %v83_v12 }
  0xe3   :  { %96 = vst.msk [vmem:[%s170_s3 + $0x4] sm:$0xf] %vm94_vm2, %v108_v14 }

// kernel: seq2seq_transformer_forward.39
= control target key start
LH: loop header
LB: loop body
LE: loop exit
PB: predicated region body
PF: predicated region fallthrough
CT: control target
= control target key end

     0   :  { %v124_v0 = vmov 0.0   ;;  %vm125_vm0 = vmmov 0   ;;  %vm41_vm1 = vcmask 261120   ;;  %vm94_vm2 = vcmask 257024   ;;  %s167_s1 = inlined_call_operand.vmem [shape: bf16[32,32], index: 1, kind: input, shape index: {}]   ;;  %s168_s0 = inlined_call_operand.vmem [shape: f32[16,32], index: 0, kind: input, shape index: {}]   ;;  %s169_s2 = inlined_call_operand.vmem [shape: f32[1,32], index: 2, kind: input, shape index: {}]   ;;  %s170_s3 = inlined_call_operand.vmem [shape: bf16[16,32], index: 3, kind: output, shape index: {}]  }
   0x1   :  { %112 = vmatprep.subr.bf16.mxu0 %v124_v0  ;;  %v122_v1 = vld [vmem:[%s167_s1] sm:$0xff]   ;;  %116 = vmatprep.mubr.msk.bf16.mxu0 %vm125_vm0, %v124_v0  ;;  %v123_v2 = vld [vmem:[%s167_s1 + $0x8] sm:$0xff]  }
   0x2   :  { %113 = vmatpush3.bf16.msra.mxu0 %v122_v1  ;;  %v15_v3 = vld [vmem:[%s168_s0] sm:$0xff]  ;;  %v16_v4 = vld [vmem:[%s168_s0 + $0x8] sm:$0xff] }
   0x3   :  { %114 = vmatprep.subr.bf16.mxu0 %v124_v0  ;;  %v17_v5 = vpack.c.bf16 %v16_v4, %v15_v3  ;;  %v101_v6 = vld [vmem:[%s169_s2] ss:$0 sm:$0xff] }
   0x6   :  { %115 = vmatpush3.bf16.msra.mxu0 %v123_v2 }
   0x9   :  { %117 = vmatmul.mubr.msk.bf16.vlgmr.msra.gmra.mrb[0].mxu0 %vm41_vm1, %v17_v5 }
  0xdc   :  { %v79_v7 = vpop.f32.mrb[0].mxu0 }
  0xdd   :  { %v80_v8 = vadd.f32 %v101_v6, %v79_v7  ;;  %v118_v9 = vpop.f32.mrb[1].mxu0 }
  0xde   :  { %v82_v10 = vpop.f32.mrb[2].mxu0 }
  0xdf   :  { %v107_v11 = vpack.c.bf16 %v80_v8, %v80_v8  ;;  %v83_v12 = vadd.f32 %v101_v6, %v82_v10  ;;  %v119_v13 = vpop.f32.mrb[3].mxu0 }
  0xe1   :  { %95 = vst.msk [vmem:[%s170_s3] sm:$0xf] %vm94_vm2, %v107_v11  ;;  %v108_v14 = vpack.c.bf16 %v83_v12, %v83_v12 }
  0xe3   :  { %96 = vst.msk [vmem:[%s170_s3 + $0x4] sm:$0xf] %vm94_vm2, %v108_v14 }

// kernel: seq2seq_transformer_forward.41
= control target key start
LH: loop header
LB: loop body
LE: loop exit
PB: predicated region body
PF: predicated region fallthrough
CT: control target
= control target key end

     0   :  { %s950_s15 = smov 0   ;;  %s1048_s0 = inlined_call_operand.vmem [shape: bf16[2,8,32], index: 0, kind: input, shape index: {}]   ;;  %s1049_s1 = inlined_call_operand.vmem [shape: bf16[2,8,64], index: 1, kind: input, shape index: {}]   ;;  %s1050_s2 = inlined_call_operand.vmem [shape: f32[8,8], index: 2, kind: input, shape index: {}]   ;;  %s1051_s3 = inlined_call_operand.vmem [shape: f32[2,1,8], index: 3, kind: input, shape index: {}]   ;;  %s1052_s4 = inlined_call_operand.vmem [shape: bf16[2,8,32], index: 4, kind: output, shape index: {}]  }
   0x1 LB: > { %s782_s16 = sadd.s32 4294967295, %s911_s15   ;;  %p786_p0 = scmp.ge.s32.totalorder %s911_s15, 1  ;;  %s911_s15 = sphi %s950_s15, %s14_s15  }
   0x2   : > { %p178_p1 = scmp.lt.s32.totalorder %s911_s15, 3 }
   0x4   : > { %p179_p2 = pnand %p786_p0, %p178_p1 }
   0x5   : > { %p209_p3 = scmp.lt.s32.totalorder (!%p179_p2), %s782_s16, 1  ;;  %v913_v0 = vmov (!%p179_p2), 0.0   ;;  %vm914_vm0 = vmmov (!%p179_p2), 0   ;;  %vm236_vm1 = vcmask (!%p179_p2), 64512   ;;  %v225_v4 = vld [vmem:[%s1050_s2] sm:$0xff] (!%p179_p2)  ;;  %s915_s29 = smov (!%p179_p2), 96  }
   0x6   : > { %182 = sbr.rel (%p179_p2) target bundleno = 1445 (0x5a5), region = 36  ;;  %819 = vmatprep.subr.bf16.mxu0 (!%p179_p2), %v913_v0  ;;  %821 = vmatprep.mubr.msk.bf16.mxu0 (!%p179_p2), %vm914_vm0, %v913_v0  ;;  %s916_s30 = smov (!%p179_p2), 120   ;;  %vm305_vm2 = vcmask (!%p179_p2), 1043456   ;;  %vm701_vm3 = vcmask (!%p179_p2), 130048   ;;  %vm703_vm4 = vcmask (!%p179_p2), 195584   ;;  %vm706_vm5 = vcmask (!%p179_p2), 257024  }
   0x7   : > { %825 = vmatprep.subr.bf16.mxu1 (!%p179_p2), %v913_v0  ;;  %827 = vmatprep.mubr.msk.bf16.mxu1 (!%p179_p2), %vm914_vm0, %v913_v0  ;;  %s917_s5 = smov (!%p179_p2), 112   ;;  %s918_s6 = smov (!%p179_p2), 104  }
   0x8   : > { %s919_s7 = smov (!%p179_p2), 88   ;;  %s920_s8 = smov (!%p179_p2), 72  }
   0x9   : > { %s921_s9 = smov (!%p179_p2), 80   ;;  %s922_s10 = smov (!%p179_p2), 8  }
   0xa   : > { %s923_s11 = smov (!%p179_p2), 16   ;;  %s924_s12 = smov (!%p179_p2), 24  }
   0xd   : > { %s1054_s16 = smov (!%p209_p3, %s782_s16), 1 }
   0xe   : > { %s964_s17 = sshll.u32 %s1054_s16, 2  ;;  %s219_s26 = scalar_lea.vmem %s1051_s3, %s1054_s16 }
   0xf   : > { %s216_s20 = scalar_lea.vmem %s1049_s1, %s964_s17  ;;  %s212_s23 = scalar_lea.vmem %s1048_s0, %s964_s17  ;;  %v790_v5 = vld [vmem:[%s219_s26] ss:$0 sm:$0xff] }
  0x10   : > { %v235_v1 = vld [vmem:[%s216_s20] sm:$0xf]  ;;  %v985_v6 = vadd.f32 %v790_v5, %v225_v4  ;;  %s223_s16 = scalar_lea.vmem %s1052_s4, %s964_s17 }
  0x11   : > { %v241_v2 = vsel %vm236_vm1, %v235_v1, 0  ;;  %v234_v3 = vld [vmem:[%s212_s23] sm:$0xf]  ;;  %v989_v14 = vcombine.low %v235_v1, %v235_v1 }
  0x12   : > { %820 = vmatpush3.bf16.xpose.msra.mxu0 %v241_v2  ;;  %v794_v15 = vcombine.low %v234_v3, %v234_v3 }
  0x13   : > { %837 = vmatprep.subr.bf16.mxu0 %v913_v0  ;;  %300 = vrot.lane.b32.xlu1 %v989_v14, %s915_s29 }
  0x17   : > { %354 = vrot.lane.b32.xlu1 %v989_v14, %s916_s30 }
  0x19   : > { %822 = vmatmul.mubr.msk.bf16.vlgmr.msra.gmra.mrb[0].mxu0 %vm236_vm1, %v234_v3 }
  0x1a   : > { %839 = vmatprep.mubr.msk.bf16.mxu0 %vm914_vm0, %v913_v0 }
  0x1b   : > { %466 = vrot.lane.b32.xlu1 %v989_v14, %s917_s5 }
  0x1f   : > { %464 = vrot.lane.b32.xlu1 %v794_v15, %s917_s5 }
  0x23   : > { %578 = vrot.lane.b32.xlu1 %v989_v14, %s918_s6 }
  0x27   : > { %576 = vrot.lane.b32.xlu1 %v794_v15, %s918_s6 }
  0x85   : > { %v301_v21 = vpop.permute.xlu1 %300 }
  0x86   : > { %v307_v22 = vsel %vm305_vm2, %v301_v21, 0 }
  0x87   : > { %826 = vmatpush3.bf16.msra.mxu1 %v307_v22 }
  0x88   : > { %831 = vmatprep.subr.bf16.mxu1 %v913_v0 }
  0x89   : > { %v355_v25 = vpop.permute.xlu1 %354 }
  0x8a   : > { %v360_v27 = vsel %vm236_vm1, %v355_v25, 0 }
  0x8d   : > { %v467_v29 = vpop.permute.xlu1 %466 }
  0x8e   : > { %v472_v32 = vsel %vm236_vm1, %v467_v29, 0 }
  0x91   : > { %v465_v31 = vpop.permute.xlu1 %464 }
  0x95   : > { %v579_v33 = vpop.permute.xlu1 %578 }
  0x96   : > { %v584_v34 = vsel %vm236_vm1, %v579_v33, 0 }
  0x99   : > { %v577_v35 = vpop.permute.xlu1 %576 }
  0xec   : > { %v277_v7 = vpop.f32.mrb[0].mxu0 }
  0xed   : > { %v283_v8 = vmul.f32 0.35355338, %v277_v7  ;;  %v823_v9 = vpop.f32.mrb[1].mxu0 }
  0xee   : > { %v280_v10 = vpop.f32.mrb[2].mxu0 }
  0xef   : > { %v824_v11 = vpop.f32.mrb[3].mxu0  ;;  %v284_v12 = vadd.f32 %v283_v8, %v985_v6 }
  0xf1   : > { %v285_v13 = vsel %vm236_vm1, %v284_v12, -inf }
  0xf2   : > { %286 = vmax.xlane.f32.xlu0 %v285_v13 }
 0x17f   : > { %v287_v16 = vpop.xlane.xlu0 %286 }
 0x180   : > { %v288_v17 = vsub.f32 %v284_v12, %v287_v16 }
 0x182   : > { %v289_v18 = vmul.f32 1.442695, %v288_v17 }
 0x184   : > { %889 = vpow2.f32 %v289_v18 }
 0x18e   : > { %v890_v19 = vpop.eup %889 }
 0x18f   : > { %v291_v20 = vsel %vm236_vm1, %v890_v19, 0.0 }
 0x190   : > { %292 = vadd.xlane.f32.xlu0 %v291_v20 }
 0x1a6   : > { %352 = vrot.lane.b32.xlu0 %v794_v15, %s916_s30 }
 0x21d   : > { %v293_v23 = vpop.xlane.xlu0 %292 }
 0x21e   : > { %891 = vrcp.f32 %v293_v23 }
 0x221   : > { %v353_v30 = vpop.permute.xlu0 %352 }
 0x228   : > { %v892_v24 = vpop.eup %891 }
 0x229   : > { %v295_v26 = vmul.f32 %v892_v24, %v890_v19 }
 0x22b   : > { %v296_v28 = vpack.c.bf16 %v295_v26, %v295_v26 }
 0x22d   : > { %828 = vmatmul.mubr.msk.bf16.vlgmr.msra.gmra.mrb[0].mxu1 %vm236_vm1, %v296_v28 }
 0x22e   : > { %832 = vmatpush3.bf16.xpose.msra.mxu1 %v360_v27  ;;  %833 = vmatprep.mubr.msk.bf16.mxu1 %vm914_vm0, %v913_v0 }
 0x22f   : > { %843 = vmatprep.subr.bf16.mxu1 %v913_v0 }
 0x235   : > { %834 = vmatmul.mubr.msk.bf16.vlgmr.msra.gmra.mrb[4].mxu1 %vm236_vm1, %v353_v30 }
 0x236   : > { %844 = vmatpush3.bf16.xpose.msra.mxu1 %v472_v32  ;;  %845 = vmatprep.mubr.msk.bf16.mxu1 %vm914_vm0, %v913_v0 }
 0x237   : > { %855 = vmatprep.subr.bf16.mxu1 %v913_v0 }
 0x23d   : > { %846 = vmatmul.mubr.msk.bf16.vlgmr.msra.gmra.mrb[8].mxu1 %vm236_vm1, %v465_v31 }
 0x23e   : > { %856 = vmatpush3.bf16.xpose.msra.mxu1 %v584_v34  ;;  %857 = vmatprep.mubr.msk.bf16.mxu1 %vm914_vm0, %v913_v0 }
 0x245   : > { %858 = vmatmul.mubr.msk.bf16.vlgmr.msra.gmra.mrb[12].mxu1 %vm236_vm1, %v577_v35 }
 0x300   : > { %v1013_v36 = vpop.f32.mrb[0].mxu1 }
 0x301   : > { %v829_v37 = vpop.f32.mrb[1].mxu1 }
 0x302   : > { %v346_v38 = vpop.f32.mrb[2].mxu1 }
 0x303   : > { %v830_v39 = vpop.f32.mrb[3].mxu1 }
 0x308   : > { %v396_v40 = vpop.f32.mrb[4].mxu1 }
 0x309   : > { %v402_v41 = vmul.f32 0.35355338, %v396_v40  ;;  %v835_v42 = vpop.f32.mrb[5].mxu1 }
 0x30a   : > { %v399_v43 = vpop.f32.mrb[6].mxu1 }
 0x30b   : > { %v836_v44 = vpop.f32.mrb[7].mxu1  ;;  %v403_v45 = vadd.f32 %v402_v41, %v985_v6 }
 0x30d   : > { %v404_v46 = vsel %vm236_vm1, %v403_v45, -inf }
 0x30e   : > { %405 = vmax.xlane.f32.xlu1 %v404_v46 }
 0x310   : > { %v508_v47 = vpop.f32.mrb[8].mxu1 }
 0x311   : > { %v514_v48 = vmul.f32 0.35355338, %v508_v47  ;;  %v847_v49 = vpop.f32.mrb[9].mxu1 }
 0x312   : > { %v511_v50 = vpop.f32.mrb[10].mxu1 }
 0x313   : > { %v848_v51 = vpop.f32.mrb[11].mxu1  ;;  %v515_v52 = vadd.f32 %v514_v48, %v985_v6 }
 0x315   : > { %v516_v53 = vsel %vm236_vm1, %v515_v52, -inf }
 0x316   : > { %517 = vmax.xlane.f32.xlu0 %v516_v53 }
 0x318   : > { %v620_v54 = vpop.f32.mrb[12].mxu1 }
 0x319   : > { %v626_v55 = vmul.f32 0.35355338, %v620_v54  ;;  %v859_v56 = vpop.f32.mrb[13].mxu1 }
 0x31a   : > { %v623_v57 = vpop.f32.mrb[14].mxu1 }
 0x31b   : > { %v860_v58 = vpop.f32.mrb[15].mxu1  ;;  %v627_v59 = vadd.f32 %v626_v55, %v985_v6 }
 0x31d   : > { %v628_v60 = vsel %vm236_vm1, %v627_v59, -inf }
 0x31e   : > { %629 = vmax.xlane.f32.xlu1 %v628_v60 }
 0x32f   : > { %416 = vrot.lane.b32.xlu1 %v989_v14, %s919_s7 }
 0x39b   : > { %v406_v61 = vpop.xlane.xlu1 %405 }
 0x39c   : > { %v407_v62 = vsub.f32 %v403_v45, %v406_v61 }
 0x39e   : > { %v408_v63 = vmul.f32 1.442695, %v407_v62 }
 0x3a0   : > { %893 = vpow2.f32 %v408_v63 }
 0x3a3   : > { %v518_v1 = vpop.xlane.xlu0 %517 }
 0x3a4   : > { %v519_v2 = vsub.f32 %v515_v52, %v518_v1 }
 0x3a6   : > { %v520_v3 = vmul.f32 1.442695, %v519_v2 }
 0x3a8   : > { %895 = vpow2.f32 %v520_v3 }
 0x3aa   : > { %v894_v4 = vpop.eup %893 }
 0x3ab   : > { %v630_v5 = vpop.xlane.xlu1 %629  ;;  %v410_v7 = vsel %vm236_vm1, %v894_v4, 0.0 }
 0x3ac   : > { %v631_v8 = vsub.f32 %v627_v59, %v630_v5  ;;  %411 = vadd.xlane.f32.xlu0 %v410_v7 }
 0x3ae   : > { %v632_v6 = vmul.f32 1.442695, %v631_v8 }
 0x3af   : > { %v417_v9 = vpop.permute.xlu1 %416 }
 0x3b0   : > { %897 = vpow2.f32 %v632_v6  ;;  %v422_v10 = vsel %vm305_vm2, %v417_v9, 0 }
 0x3b1   : > { %838 = vmatpush3.bf16.msra.mxu0 %v422_v10 }
 0x3b2   : > { %v896_v11 = vpop.eup %895  ;;  %849 = vmatprep.subr.bf16.mxu0 %v913_v0 }
 0x3b3   : > { %v522_v12 = vsel %vm236_vm1, %v896_v11, 0.0 }
 0x3b4   : > { %523 = vadd.xlane.f32.xlu1 %v522_v12 }
 0x3ba   : > { %v898_v13 = vpop.eup %897 }
 0x3bb   : > { %v634_v15 = vsel %vm236_vm1, %v898_v13, 0.0 }
 0x3bc   : > { %635 = vadd.xlane.f32.xlu0 %v634_v15 }
 0x3c5   : > { %640 = vrot.lane.b32.xlu1 %v989_v14, %s920_s8 }
 0x3d2   : > { %528 = vrot.lane.b32.xlu0 %v989_v14, %s921_s9 }
 0x439   : > { %v412_v16 = vpop.xlane.xlu0 %411 }
 0x43a   : > { %899 = vrcp.f32 %v412_v16 }
 0x441   : > { %v524_v17 = vpop.xlane.xlu1 %523 }
 0x442   : > { %901 = vrcp.f32 %v524_v17 }
 0x444   : > { %v900_v18 = vpop.eup %899 }
 0x445   : > { %v414_v19 = vmul.f32 %v900_v18, %v894_v4  ;;  %v641_v25 = vpop.permute.xlu1 %640 }
 0x446   : > { %v646_v27 = vsel %vm305_vm2, %v641_v25, 0 }
 0x447   : > { %v415_v20 = vpack.c.bf16 %v414_v19, %v414_v19 }
 0x449   : > { %v636_v21 = vpop.xlane.xlu0 %635  ;;  %840 = vmatmul.mubr.msk.bf16.vlgmr.msra.gmra.mrb[4].mxu0 %vm236_vm1, %v415_v20 }
 0x44a   : > { %903 = vrcp.f32 %v636_v21  ;;  %851 = vmatprep.mubr.msk.bf16.mxu0 %vm914_vm0, %v913_v0 }
 0x44c   : > { %v902_v22 = vpop.eup %901 }
 0x44d   : > { %v526_v23 = vmul.f32 %v902_v22, %v896_v11  ;;  %v529_v24 = vpop.permute.xlu0 %528 }
 0x44e   : > { %v534_v14 = vsel %vm305_vm2, %v529_v24, 0 }
 0x44f   : > { %850 = vmatpush3.bf16.msra.mxu0 %v534_v14  ;;  %v527_v26 = vpack.c.bf16 %v526_v23, %v526_v23 }
 0x450   : > { %861 = vmatprep.subr.bf16.mxu0 %v913_v0 }
 0x452   : > { %852 = vmatmul.mubr.msk.bf16.vlgmr.msra.gmra.mrb[8].mxu0 %vm236_vm1, %v527_v26 }
 0x453   : > { %862 = vmatpush3.bf16.msra.mxu0 %v646_v27  ;;  %863 = vmatprep.mubr.msk.bf16.mxu0 %vm914_vm0, %v913_v0 }
 0x454   : > { %v904_v28 = vpop.eup %903 }
 0x455   : > { %v638_v29 = vmul.f32 %v904_v28, %v898_v13 }
 0x457   : > { %v639_v30 = vpack.c.bf16 %v638_v29, %v638_v29 }
 0x45a   : > { %864 = vmatmul.mubr.msk.bf16.vlgmr.msra.gmra.mrb[12].mxu0 %vm236_vm1, %v639_v30 }
 0x51c   : > { %v458_v31 = vpop.f32.mrb[4].mxu0 }
 0x51d   : > { %689 = vrot.lane.b32.xlu1 %v458_v31, %s922_s10  ;;  %v841_v32 = vpop.f32.mrb[5].mxu0 }
 0x51e   : > { %v461_v33 = vpop.f32.mrb[6].mxu0 }
 0x51f   : > { %v842_v34 = vpop.f32.mrb[7].mxu0 }
 0x525   : > { %v570_v35 = vpop.f32.mrb[8].mxu0 }
 0x526   : > { %693 = vrot.lane.b32.xlu0 %v570_v35, %s923_s11  ;;  %v853_v37 = vpop.f32.mrb[9].mxu0 }
 0x527   : > { %v573_v38 = vpop.f32.mrb[10].mxu0 }
 0x528   : > { %v854_v39 = vpop.f32.mrb[11].mxu0 }
 0x52d   : > { %v682_v40 = vpop.f32.mrb[12].mxu0 }
 0x52e   : > { %697 = vrot.lane.b32.xlu1 %v682_v40, %s924_s12  ;;  %v865_v0 = vpop.f32.mrb[13].mxu0 }
 0x52f   : > { %v685_v41 = vpop.f32.mrb[14].mxu0 }
 0x530   : > { %v866_v42 = vpop.f32.mrb[15].mxu0 }
 0x58f   : > { %v690_v43 = vpop.permute.xlu1 %689 }
 0x590   : > { %v700_v45 = vsel %vm236_vm1, %v1013_v36, %v690_v43 }
 0x598   : > { %v694_v44 = vpop.permute.xlu0 %693 }
 0x599   : > { %v702_v46 = vsel %vm701_vm3, %v700_v45, %v694_v44 }
 0x5a0   : > { %v698_v47 = vpop.permute.xlu1 %697 }
 0x5a1   : > { %v704_v48 = vsel %vm703_vm4, %v702_v46, %v698_v47 }
 0x5a2   : > { %v705_v49 = vpack.c.bf16 %v704_v48, %v704_v48 }
 0x5a4   : > { %707 = vst.msk [vmem:[%s223_s16] sm:$0xf] %vm706_vm5, %v705_v49 }
 0x5a5 PF: > { %s14_s15 = sadd.s32 1, %s911_s15  }
 0x5a6   : > { %p11_p4 = scmp.ge.s32.totalorder %s14_s15, 4  }
 0x5a8   :  { %13 = sbr.rel (!%p11_p4) target bundleno = 1 (0x1), region = 72 }

// kernel: seq2seq_transformer_forward.53
= control target key start
LH: loop header
LB: loop body
LE: loop exit
PB: predicated region body
PF: predicated region fallthrough
CT: control target
= control target key end

     0   :  { %v152_v1 = vmov 0.0   ;;  %vm153_vm0 = vmmov 0   ;;  %s204_s0 = inlined_call_operand.vmem [shape: f32[16,32], index: 0, kind: input, shape index: {}]   ;;  %s205_s1 = inlined_call_operand.vmem [shape: bf16[32,48], index: 1, kind: input, shape index: {}]   ;;  %s206_s2 = inlined_call_operand.vmem [shape: f32[1,48], index: 2, kind: input, shape index: {}]   ;;  %s207_s3 = inlined_call_operand.hbm [shape: f32[16,48], index: 3, kind: output, shape index: {}]  }
   0x1   :  { %v126_v0 = vld [vmem:[%s205_s1] sm:$0xff]   ;;  %113 = vmatprep.subr.bf16.mxu0 %v152_v1  ;;  %v127_v2 = vld [vmem:[%s205_s1 + $0x8] sm:$0xff]   ;;  %117 = vmatprep.mubr.msk.bf16.mxu0 %vm153_vm0, %v152_v1 }
   0x2   :  { %114 = vmatpush3.bf16.msra.mxu0 %v126_v0  ;;  %v16_v3 = vld [vmem:[%s204_s0] sm:$0xff]  ;;  %v17_v4 = vld [vmem:[%s204_s0 + $0x8] sm:$0xff] }
   0x3   :  { %115 = vmatprep.subr.bf16.mxu0 %v152_v1 }
   0x4   :  { %8 = vsyncpa [#allocation3], 0  ;;  %v18_v5 = vpack.c.bf16 %v17_v4, %v16_v3  ;;  %vm42_vm1 = vcmask 261120   ;;  %v106_v6 = vld [vmem:[%s206_s2] ss:$0 sm:$0xff]  ;;  %s154_s1 = smov [#allocation2]  }
   0x5   :  { %s95_s22 = sshll.u32 %s154_s1, 4  ;;  %vm87_vm2 = vcmask 392192   ;;  %s96_s22 = int_to_ptr.vmem [resolvable:$true] %s95_s22 }
   0x6   :  { %116 = vmatpush3.bf16.msra.mxu0 %v127_v2  ;;  %s128_s0 = scalar_lea.vmem %s96_s22, 256  ;;  %p133_p1 = scmp.lt.s32.totalorder %s96_s22, %s96_s22 }
   0x7   :  { %p129_p0 = scmp.ne.s32.totalorder %s96_s22, %s128_s0  ;;  %p134_p2 = scmp.lt.s32.totalorder %s128_s0, %s128_s0 }
   0x9   :  { %118 = vmatmul.mubr.msk.bf16.vlgmr.msra.gmra.mrb[0].mxu0 %vm42_vm1, %v18_v5  ;;  %p135_p3 = por %p134_p2, %p133_p1 }
   0xb   :  { %p136_p4 = pnand %p135_p3, %p129_p0 }
  0xdc   :  { %v80_v7 = vpop.f32.mrb[0].mxu0 }
  0xdd   :  { %v81_v8 = vadd.f32 %v106_v6, %v80_v7  ;;  %v119_v9 = vpop.f32.mrb[1].mxu0 }
  0xde   :  { %v83_v10 = vpop.f32.mrb[2].mxu0 }
  0xdf   :  { %88 = vst.msk [vmem:[#allocation2] sm:$0xff] %vm87_vm2, %v81_v8  ;;  %v84_v11 = vadd.f32 %v106_v6, %v83_v10  ;;  %v120_v12 = vpop.f32.mrb[3].mxu0 }
  0xe1   :  { %89 = vst.msk [vmem:[#allocation2 + $0x8] sm:$0xff] %vm87_vm2, %v84_v11 }
  0xe2   :  { %139 = shalt.err (!%p136_p4)
}
  0xe3   :  { %s140_s24 = scalar_lea.hbm %s207_s3, 256 }
  0xe4   :  { %p141_p5 = scmp.ne.s32.totalorder %s207_s3, %s140_s24  ;;  %p144_p6 = scmp.lt.u32.totalorder %s140_s24, %s207_s3 }
  0xe6   :  { %p146_p7 = pnand %p144_p6, %p141_p5 }
  0xe8   :  { %149 = shalt.err (!%p146_p7)
}
  0xe9   :  { %s155_s29 = smov 128   ;;  %s156_s30 = smov 8  }
  0xea   :  { %101 = dma.vmem_to_hbm [thread:$0]  %s96_s22, 256, %s207_s3, [#allocation3], %s155_s29, %s155_s29, %s156_s30  }
  0xeb   :  { %150 = dma.done.wait [#allocation3], 256  }
  0xec   :  { %151 = vsyncadd [#allocation3], 4294967040 }
  0xed   :  { %105 = vsyncpa [#allocation3], 1 }

</bundles_post_ra>
